<compile_context>
chip_gen: v7x
topology: tpu7x:2x2x1
jax: 0.10.0
libtpu: 0.0.40
codegen_flags: <defaults>
</compile_context>

<pallas_src>
import functools

import jax
import jax.numpy as jnp
from jax import lax
from jax.experimental import pallas as pl
from jax.experimental.pallas import tpu as pltpu

NEG_INF = -1e30  # pad bias for fake tag columns -> exp() underflows to exactly 0


# --------------------------- fused LSTM + FC kernel --------------------------
def lstm_fc_kernel(x_ref, wih_ref, whh_ref, b_ref, wfc_ref, bfc_ref,
                   out_ref, h_sc, c_sc, hstash_sc):
    # x_ref:      (Tc, Bblk, E)    time-major embedding chunk (f32)
    # wih_ref:    (E,  4*Hp)       VMEM-resident weights (f32 or bf16)
    # whh_ref:    (Hp, 4*Hp)
    # b_ref:      (1,  4*Hp)       b_ih + b_hh, gate-padded (f32)
    # wfc_ref:    (Hp, NTp)
    # bfc_ref:    (1,  NTp)        padded tag columns hold NEG_INF (f32)
    # out_ref:    (Bblk, Tc*NTp)   lane-dense log-prob chunk
    # h_sc/c_sc:  (Bblk, Hp)       recurrent state, carried across time chunks
    # hstash_sc:  (Tc*Bblk, Hp)    per-chunk hidden stash -> batched FC epilogue
    t_chunk_idx = pl.program_id(1)

    @pl.when(t_chunk_idx == 0)
    def _():
        h_sc[...] = jnp.zeros_like(h_sc)
        c_sc[...] = jnp.zeros_like(c_sc)

    Tc, Bblk, E = x_ref.shape
    Hp = whh_ref.shape[0]
    NTp = wfc_ref.shape[1]
    wdt = wih_ref.dtype            # weight dtype (f32, or bf16 on v7x)

    # ---- hoisted input projection: one (Tc*Bblk, E) @ (E, 4Hp) matmul per chunk ----
    x2d = x_ref[...].reshape(Tc * Bblk, E)            # free view (Bblk % 8 == 0)
    gx = jnp.dot(x2d.astype(wdt), wih_ref[...],
                 preferred_element_type=jnp.float32) + b_ref[...]   # (Tc*Bblk, 4Hp)

    whh = whh_ref[...]
    h = h_sc[...]
    c = c_sc[...]
    # Serial recurrence (statically unrolled): only h @ W_hh + gate elementwise on the
    # critical path.  Every slice / store offset is a static multiple of 128 lanes
    # (or 8 sublanes) -> unmasked vector ops throughout.
    # NOTE: for large Bblk*Hp (> ~128 KiB of live h/c), route h/c through the scratch
    # refs per step instead of carrying SSA values to avoid vreg spills.
    for t in range(Tc):
        gates = gx[t * Bblk:(t + 1) * Bblk, :] + jnp.dot(
            h.astype(wdt), whh, preferred_element_type=jnp.float32)  # (Bblk, 4Hp)
        i_g = jax.nn.sigmoid(gates[:, 0 * Hp:1 * Hp])
        f_g = jax.nn.sigmoid(gates[:, 1 * Hp:2 * Hp])
        g_g = jnp.tanh(gates[:, 2 * Hp:3 * Hp])
        o_g = jax.nn.sigmoid(gates[:, 3 * Hp:4 * Hp])
        c = f_g * c + i_g * g_g
        h = o_g * jnp.tanh(c)
        hstash_sc[t * Bblk:(t + 1) * Bblk, :] = h      # stash; FC happens after loop

    h_sc[...] = h
    c_sc[...] = c

    # ---- batched FC + log_softmax epilogue (off the serial path) --------------------
    logits = jnp.dot(hstash_sc[...].astype(wdt), wfc_ref[...],
                     preferred_element_type=jnp.float32) + bfc_ref[...]  # (Tc*Bblk, NTp)
    m = jnp.max(logits, axis=-1, keepdims=True)
    z = logits - m
    lse = jnp.log(jnp.sum(jnp.exp(z), axis=-1, keepdims=True))
    logp = z - lse                                     # (Tc*Bblk, NTp)
    # Tc full-tile, lane-dense stores at static offsets (Bblk % 8 == 0, NTp % 128 == 0).
    for t in range(Tc):
        out_ref[:, t * NTp:(t + 1) * NTp] = logp[t * Bblk:(t + 1) * Bblk, :]


# ------------------------------- helpers --------------------------------------
def _round_up(x, m):
    return ((x + m - 1) // m) * m


def _choose_b_block(batch, requested):
    """Batch tile: multiple of 8, <= padded batch, >= 2 blocks when batch allows."""
    requested = max(8, _round_up(requested, 8))
    bp8 = _round_up(batch, 8)
    bb = min(requested, bp8)
    if bp8 >= 16:  # keep >= 2 batch blocks so v7x's two TensorCores both get work
        bb = min(bb, _round_up(bp8 // 2, 8))
    return max(bb, 8)


def _vmem_budget(*, E, Hp, G4, NTp, Tc, Bblk, wbytes):
    """Explicit scoped-VMEM budget (bytes) for the kernel."""
    weights = (E * G4 + Hp * G4 + Hp * NTp) * wbytes + (G4 + NTp) * 4  # Buffered(1)
    x_tiles = 2 * Tc * Bblk * E * 4                                    # double-buffered
    out_tiles = 2 * Bblk * Tc * NTp * 4                                # double-buffered
    scratch = (2 * Bblk * Hp + Tc * Bblk * Hp) * 4                     # h, c, h-stash
    internal = (Tc * Bblk * G4 + 2 * Tc * Bblk * NTp) * 4              # gx, logits temps
    total = weights + x_tiles + out_tiles + scratch + internal
    # generous headroom for compiler-internal scratch; cap at v7x's 64 MiB per TC
    return int(min(max(2 * total + (8 << 20), 32 << 20), 64 << 20))


# ------------------------------- wrapper --------------------------------------
@functools.partial(jax.jit, static_argnames=("n_tags", "b_block", "t_chunk"))
def rnn_forward(inputs, params, *, n_tags, b_block=32, t_chunk=16):
    """inputs: (B, T) int32 token ids -> (B*T, n_tags) log-probs."""
    emb_table = params["embedding"]      # (V, E) f32
    w_ih = params["w_ih"]                # (E, 4*Hp)
    w_hh = params["w_hh"]                # (Hp, 4*Hp)
    b_lstm = params["b_lstm"]            # (1, 4*Hp) f32
    w_fc = params["w_fc"]                # (Hp, NTp)
    b_fc = params["b_fc"]                # (1, NTp) f32

    B, T = inputs.shape
    E = emb_table.shape[1]
    Hp = w_hh.shape[0]
    G4 = w_ih.shape[1]
    NTp = w_fc.shape[1]

    bb = _choose_b_block(B, b_block)
    Bp = _round_up(B, bb)
    Tc = min(t_chunk, T)
    Tp = _round_up(T, Tc)                # pad T UP; padded trailing steps dropped below
    nb = Bp // bb
    nt = Tp // Tc

    # pad batch/time of token ids, then gather embeddings in time-major layout.
    # TODO(synk): the embedding gather could be fused into the kernel via scalar-prefetched
    # ids + per-row DMA; kept as a single XLA gather in the wrapper for simplicity.
    ids = jnp.zeros((Bp, Tp), dtype=inputs.dtype).at[:B, :T].set(inputs)
    x_tbe = jnp.take(emb_table, ids.T, axis=0)          # (Tp, Bp, E)

    wbytes = jnp.dtype(w_ih.dtype).itemsize
    vmem_bytes = _vmem_budget(E=E, Hp=Hp, G4=G4, NTp=NTp, Tc=Tc, Bblk=bb, wbytes=wbytes)

    out = pl.pallas_call(
        lstm_fc_kernel,
        out_shape=jax.ShapeDtypeStruct((Bp, Tp * NTp), jnp.float32),
        grid_spec=pltpu.PrefetchScalarGridSpec(
            num_scalar_prefetch=0,
            grid=(nb, nt),
            in_specs=[
                pl.BlockSpec((Tc, bb, E), lambda b, t: (t, b, 0)),
                # resident weights: constant index_map -> single-buffer them
                pl.BlockSpec((E, G4), lambda b, t: (0, 0),
                             pipeline_mode=pl.Buffered(1)),
                pl.BlockSpec((Hp, G4), lambda b, t: (0, 0),
                             pipeline_mode=pl.Buffered(1)),
                pl.BlockSpec((1, G4), lambda b, t: (0, 0),
                             pipeline_mode=pl.Buffered(1)),
                pl.BlockSpec((Hp, NTp), lambda b, t: (0, 0),
                             pipeline_mode=pl.Buffered(1)),
                pl.BlockSpec((1, NTp), lambda b, t: (0, 0),
                             pipeline_mode=pl.Buffered(1)),
            ],
            out_specs=pl.BlockSpec((bb, Tc * NTp), lambda b, t: (b, t)),
            scratch_shapes=[
                pltpu.VMEM((bb, Hp), jnp.float32),        # h carry
                pltpu.VMEM((bb, Hp), jnp.float32),        # c carry
                pltpu.VMEM((Tc * bb, Hp), jnp.float32),   # per-chunk h stash
            ],
        ),
        compiler_params=pltpu.CompilerParams(
            dimension_semantics=("parallel", "arbitrary"),
            vmem_limit_bytes=vmem_bytes,
        ),
    )(x_tbe, w_ih, w_hh, b_lstm, w_fc, b_fc)

    # (Bp, Tp*NTp) -> (Bp, Tp, NTp) is a free view; drop padding; row = b*T + t
    out = out.reshape(Bp, Tp, NTp)[:B, :T, :n_tags]
    return out.reshape(B * T, n_tags)


# ------------------------------ parameters ------------------------------------
def init_torch_like_params(key, vocab_size, embedding_dim, hidden_dim, n_tags):
    """Parameters in native PyTorch shapes (for the pure-JAX reference)."""
    ks = jax.random.split(key, 7)
    scale = 0.1
    return {
        "embedding": (scale * jax.random.normal(ks[6], (vocab_size, embedding_dim))).astype(jnp.float32),
        "w_ih": (scale * jax.random.normal(ks[0], (4 * hidden_dim, embedding_dim))).astype(jnp.float32),
        "w_hh": (scale * jax.random.normal(ks[1], (4 * hidden_dim, hidden_dim))).astype(jnp.float32),
        "b_ih": (scale * jax.random.normal(ks[2], (4 * hidden_dim,))).astype(jnp.float32),
        "b_hh": (scale * jax.random.normal(ks[3], (4 * hidden_dim,))).astype(jnp.float32),
        "w_fc": (scale * jax.random.normal(ks[4], (n_tags, hidden_dim))).astype(jnp.float32),
        "b_fc": (scale * jax.random.normal(ks[5], (n_tags,))).astype(jnp.float32),
    }


def pack_params_for_kernel(native, hidden_dim, n_tags, weight_dtype=jnp.float32):
    """Transpose + zero-pad to lane-aligned kernel layouts.

    Gate g occupies columns [g*Hp, g*Hp + H); padded hidden units get zero
    weights/bias so their state stays exactly 0 (tanh(0)=0).  Padded tag
    columns get bias NEG_INF so they contribute nothing to the softmax.

    weight_dtype=jnp.bfloat16 halves resident weight VMEM and hits the MXU's
    native rate (recommended on v7x); biases stay f32.
    """
    E = native["w_ih"].shape[1]
    H = hidden_dim
    Hp = _round_up(H, 128)
    NTp = _round_up(n_tags, 128)

    wg_ih = native["w_ih"].reshape(4, H, E)        # PyTorch gate order [i, f, g, o]
    wg_hh = native["w_hh"].reshape(4, H, H)
    bg = (native["b_ih"] + native["b_hh"]).reshape(4, H)

    w_ih = jnp.zeros((E, 4 * Hp), jnp.float32)
    w_hh = jnp.zeros((Hp, 4 * Hp), jnp.float32)
    b_lstm = jnp.zeros((1, 4 * Hp), jnp.float32)
    for g in range(4):
        w_ih = w_ih.at[:, g * Hp:g * Hp + H].set(wg_ih[g].T)
        w_hh = w_hh.at[:H, g * Hp:g * Hp + H].set(wg_hh[g].T)
        b_lstm = b_lstm.at[0, g * Hp:g * Hp + H].set(bg[g])

    w_fc = jnp.zeros((Hp, NTp), jnp.float32).at[:H, :n_tags].set(native["w_fc"].T)
    b_fc = jnp.full((1, NTp), NEG_INF, jnp.float32).at[0, :n_tags].set(native["b_fc"])

    return {
        "embedding": native["embedding"],
        "w_ih": w_ih.astype(weight_dtype),
        "w_hh": w_hh.astype(weight_dtype),
        "b_lstm": b_lstm,
        "w_fc": w_fc.astype(weight_dtype),
        "b_fc": b_fc,
    }


# ------------------------------ pure-JAX reference -----------------------------
def rnn_reference(inputs, native, hidden_dim):
    emb = jnp.take(native["embedding"], inputs, axis=0)          # (B, T, E)
    w_ih, w_hh = native["w_ih"], native["w_hh"]
    bias = native["b_ih"] + native["b_hh"]
    H = hidden_dim
    B, T, _ = emb.shape

    def step(carry, x_t):
        h, c = carry
        gates = x_t @ w_ih.T + h @ w_hh.T + bias
        i = jax.nn.sigmoid(gates[:, 0 * H:1 * H])
        f = jax.nn.sigmoid(gates[:, 1 * H:2 * H])
        g = jnp.tanh(gates[:, 2 * H:3 * H])
        o = jax.nn.sigmoid(gates[:, 3 * H:4 * H])
        c = f * c + i * g
        h = o * jnp.tanh(c)
        return (h, c), h

    init = (jnp.zeros((B, H), jnp.float32), jnp.zeros((B, H), jnp.float32))
    _, hs = lax.scan(step, init, jnp.swapaxes(emb, 0, 1))        # (T, B, H)
    hs = jnp.swapaxes(hs, 0, 1).reshape(B * T, H)
    logits = hs @ native["w_fc"].T + native["b_fc"]
    return jax.nn.log_softmax(logits, axis=-1)


# ----------------------------------- main --------------------------------------
if __name__ == "__main__":
    B, T = 2, 8
    vocab_size, embedding_dim, hidden_dim, n_tags = 16, 32, 32, 8

    key = jax.random.PRNGKey(0)
    k_params, k_inputs = jax.random.split(key)
    native = init_torch_like_params(k_params, vocab_size, embedding_dim,
                                    hidden_dim, n_tags)
    # f32 weights here for tight parity with the f32 reference; pass
    # weight_dtype=jnp.bfloat16 on v7x to halve weight VMEM / double MXU rate.
    params = pack_params_for_kernel(native, hidden_dim, n_tags,
                                    weight_dtype=jnp.float32)
    inputs = jax.random.randint(k_inputs, (B, T), 0, vocab_size, dtype=jnp.int32)

    out = rnn_forward(inputs, params, n_tags=n_tags)
    jax.block_until_ready(out)
    assert out.shape == (B * T, n_tags)

    # correctness check against a pure-JAX LSTM reference (MXU default precision
    # gives ~1e-3-level differences vs full-f32; use a generous tolerance)
    ref = rnn_reference(inputs, native, hidden_dim)
    max_err = float(jnp.max(jnp.abs(out - ref)))
    assert max_err < 1e-2, f"mismatch vs reference: max abs err {max_err}"

    print("KERNEL_OK")
</pallas_src>

<mosaic_0001>
module attributes {stable_mosaic.version = 11 : i64} {
  func.func @lstm_fc_kernel(%arg0: i32, %arg1: i32, %arg2: memref<8x8x32xf32, #tpu.memory_space<vmem>>, %arg3: memref<32x512xf32, #tpu.memory_space<vmem>>, %arg4: memref<128x512xf32, #tpu.memory_space<vmem>>, %arg5: memref<1x512xf32, #tpu.memory_space<vmem>>, %arg6: memref<128x128xf32, #tpu.memory_space<vmem>>, %arg7: memref<1x128xf32, #tpu.memory_space<vmem>>, %arg8: memref<8x1024xf32, #tpu.memory_space<vmem>>, %arg9: memref<8x128xf32, #tpu.memory_space<vmem>>, %arg10: memref<8x128xf32, #tpu.memory_space<vmem>>, %arg11: memref<64x128xf32, #tpu.memory_space<vmem>>) attributes {dimension_semantics = [#tpu.dimension_semantics<parallel>, #tpu.dimension_semantics<arbitrary>], iteration_bounds = array<i64: 1, 1>, scalar_prefetch = 0 : i64, scratch_operands = 3 : i64, tpu.core_type = #tpu.core_type<tc>, window_params = [{transform_indices = @transform_0, window_bounds = array<i64: 8, 8, 32>}, {pipeline_mode = #tpu.pipeline_mode<synchronous>, transform_indices = @transform_1, window_bounds = array<i64: 32, 512>}, {pipeline_mode = #tpu.pipeline_mode<synchronous>, transform_indices = @transform_2, window_bounds = array<i64: 128, 512>}, {pipeline_mode = #tpu.pipeline_mode<synchronous>, transform_indices = @transform_3, window_bounds = array<i64: 1, 512>}, {pipeline_mode = #tpu.pipeline_mode<synchronous>, transform_indices = @transform_4, window_bounds = array<i64: 128, 128>}, {pipeline_mode = #tpu.pipeline_mode<synchronous>, transform_indices = @transform_5, window_bounds = array<i64: 1, 128>}, {transform_indices = @transform_6, window_bounds = array<i64: 8, 1024>}]} {
    %c0_i32 = arith.constant 0 : i32
    %0 = arith.cmpi eq, %arg1, %c0_i32 : i32
    %1 = arith.extui %0 : i1 to i32
    %c0_i32_0 = arith.constant 0 : i32
    %2 = arith.cmpi ne, %1, %c0_i32_0 : i32
    scf.if %2 {
      %cst_76 = arith.constant 0.000000e+00 : f32
      %279 = vector.broadcast %cst_76 : f32 to vector<8x128xf32>
      %c0_77 = arith.constant 0 : index
      %c0_78 = arith.constant 0 : index
      %280 = vector.load %arg9[%c0_77, %c0_78] : memref<8x128xf32, #tpu.memory_space<vmem>>, vector<8x128xf32>
      tpu.vector_store %arg9[%c0_77, %c0_78], %279 {strides = array<i32>} : memref<8x128xf32, #tpu.memory_space<vmem>>, vector<8x128xf32>,
      %cst_79 = arith.constant 0.000000e+00 : f32
      %281 = vector.broadcast %cst_79 : f32 to vector<8x128xf32>
      %c0_80 = arith.constant 0 : index
      %c0_81 = arith.constant 0 : index
      %282 = vector.load %arg10[%c0_80, %c0_81] : memref<8x128xf32, #tpu.memory_space<vmem>>, vector<8x128xf32>
      tpu.vector_store %arg10[%c0_80, %c0_81], %281 {strides = array<i32>} : memref<8x128xf32, #tpu.memory_space<vmem>>, vector<8x128xf32>,
    } else {
    }
    %c0 = arith.constant 0 : index
    %c0_1 = arith.constant 0 : index
    %c0_2 = arith.constant 0 : index
    %3 = vector.load %arg2[%c0, %c0_1, %c0_2] : memref<8x8x32xf32, #tpu.memory_space<vmem>>, vector<8x8x32xf32>
    %4 = vector.shape_cast %3 : vector<8x8x32xf32> to vector<64x32xf32>
    %c0_3 = arith.constant 0 : index
    %c0_4 = arith.constant 0 : index
    %5 = vector.load %arg3[%c0_3, %c0_4] : memref<32x512xf32, #tpu.memory_space<vmem>>, vector<32x512xf32>
    %cst = arith.constant dense<0.000000e+00> : vector<64x512xf32>
    %6 = tpu.matmul %4, %5, %cst {dimension_numbers = #tpu.dot_dimension_numbers<[1], [0], [0], [1], [0, 0, 1, 1], [], []>} : vector<64x32xf32>, vector<32x512xf32>, vector<64x512xf32> -> vector<64x512xf32>
    %c0_5 = arith.constant 0 : index
    %c0_6 = arith.constant 0 : index
    %7 = vector.load %arg5[%c0_5, %c0_6] : memref<1x512xf32, #tpu.memory_space<vmem>>, vector<1x512xf32>
    %8 = vector.broadcast %7 : vector<1x512xf32> to vector<64x512xf32>
    %9 = arith.addf %6, %8 : vector<64x512xf32>
    %c0_7 = arith.constant 0 : index
    %c0_8 = arith.constant 0 : index
    %10 = vector.load %arg4[%c0_7, %c0_8] : memref<128x512xf32, #tpu.memory_space<vmem>>, vector<128x512xf32>
    %c0_9 = arith.constant 0 : index
    %c0_10 = arith.constant 0 : index
    %11 = vector.load %arg9[%c0_9, %c0_10] : memref<8x128xf32, #tpu.memory_space<vmem>>, vector<8x128xf32>
    %c0_11 = arith.constant 0 : index
    %c0_12 = arith.constant 0 : index
    %12 = vector.load %arg10[%c0_11, %c0_12] : memref<8x128xf32, #tpu.memory_space<vmem>>, vector<8x128xf32>
    %13 = vector.extract_strided_slice %9 {offsets = [0, 0], sizes = [8, 512], strides = [1, 1]} : vector<64x512xf32> to vector<8x512xf32>
    %cst_13 = arith.constant dense<0.000000e+00> : vector<8x512xf32>
    %14 = tpu.matmul %11, %10, %cst_13 {dimension_numbers = #tpu.dot_dimension_numbers<[1], [0], [0], [1], [0, 0, 1, 1], [], []>} : vector<8x128xf32>, vector<128x512xf32>, vector<8x512xf32> -> vector<8x512xf32>
    %15 = arith.addf %13, %14 : vector<8x512xf32>
    %16 = vector.extract_strided_slice %15 {offsets = [0, 0], sizes = [8, 128], strides = [1, 1]} : vector<8x512xf32> to vector<8x128xf32>
    %17 = arith.negf %16 : vector<8x128xf32>
    %18 = math.exp %17 : vector<8x128xf32>
    %cst_14 = arith.constant 1.000000e+00 : f32
    %19 = vector.broadcast %cst_14 : f32 to vector<8x128xf32>
    %20 = arith.addf %19, %18 : vector<8x128xf32>
    %21 = arith.divf %19, %20 : vector<8x128xf32>
    %22 = vector.extract_strided_slice %15 {offsets = [0, 128], sizes = [8, 128], strides = [1, 1]} : vector<8x512xf32> to vector<8x128xf32>
    %23 = arith.negf %22 : vector<8x128xf32>
    %24 = math.exp %23 : vector<8x128xf32>
    %cst_15 = arith.constant 1.000000e+00 : f32
    %25 = vector.broadcast %cst_15 : f32 to vector<8x128xf32>
    %26 = arith.addf %25, %24 : vector<8x128xf32>
    %27 = arith.divf %25, %26 : vector<8x128xf32>
    %28 = vector.extract_strided_slice %15 {offsets = [0, 256], sizes = [8, 128], strides = [1, 1]} : vector<8x512xf32> to vector<8x128xf32>
    %29 = math.tanh %28 : vector<8x128xf32>
    %30 = vector.extract_strided_slice %15 {offsets = [0, 384], sizes = [8, 128], strides = [1, 1]} : vector<8x512xf32> to vector<8x128xf32>
    %31 = arith.negf %30 : vector<8x128xf32>
    %32 = math.exp %31 : vector<8x128xf32>
    %cst_16 = arith.constant 1.000000e+00 : f32
    %33 = vector.broadcast %cst_16 : f32 to vector<8x128xf32>
    %34 = arith.addf %33, %32 : vector<8x128xf32>
    %35 = arith.divf %33, %34 : vector<8x128xf32>
    %36 = arith.mulf %27, %12 : vector<8x128xf32>
    %37 = arith.mulf %21, %29 : vector<8x128xf32>
    %38 = arith.addf %36, %37 : vector<8x128xf32>
    %39 = math.tanh %38 : vector<8x128xf32>
    %40 = arith.mulf %35, %39 : vector<8x128xf32>
    %c0_17 = arith.constant 0 : index
    %c0_18 = arith.constant 0 : index
    %41 = vector.load %arg11[%c0_17, %c0_18] : memref<64x128xf32, #tpu.memory_space<vmem>>, vector<8x128xf32>
    tpu.vector_store %arg11[%c0_17, %c0_18], %40 {strides = array<i32>} : memref<64x128xf32, #tpu.memory_space<vmem>>, vector<8x128xf32>,
    %42 = vector.extract_strided_slice %9 {offsets = [8, 0], sizes = [8, 512], strides = [1, 1]} : vector<64x512xf32> to vector<8x512xf32>
    %cst_19 = arith.constant dense<0.000000e+00> : vector<8x512xf32>
    %43 = tpu.matmul %40, %10, %cst_19 {dimension_numbers = #tpu.dot_dimension_numbers<[1], [0], [0], [1], [0, 0, 1, 1], [], []>} : vector<8x128xf32>, vector<128x512xf32>, vector<8x512xf32> -> vector<8x512xf32>
    %44 = arith.addf %42, %43 : vector<8x512xf32>
    %45 = vector.extract_strided_slice %44 {offsets = [0, 0], sizes = [8, 128], strides = [1, 1]} : vector<8x512xf32> to vector<8x128xf32>
    %46 = arith.negf %45 : vector<8x128xf32>
    %47 = math.exp %46 : vector<8x128xf32>
    %cst_20 = arith.constant 1.000000e+00 : f32
    %48 = vector.broadcast %cst_20 : f32 to vector<8x128xf32>
    %49 = arith.addf %48, %47 : vector<8x128xf32>
    %50 = arith.divf %48, %49 : vector<8x128xf32>
    %51 = vector.extract_strided_slice %44 {offsets = [0, 128], sizes = [8, 128], strides = [1, 1]} : vector<8x512xf32> to vector<8x128xf32>
    %52 = arith.negf %51 : vector<8x128xf32>
    %53 = math.exp %52 : vector<8x128xf32>
    %cst_21 = arith.constant 1.000000e+00 : f32
    %54 = vector.broadcast %cst_21 : f32 to vector<8x128xf32>
    %55 = arith.addf %54, %53 : vector<8x128xf32>
    %56 = arith.divf %54, %55 : vector<8x128xf32>
    %57 = vector.extract_strided_slice %44 {offsets = [0, 256], sizes = [8, 128], strides = [1, 1]} : vector<8x512xf32> to vector<8x128xf32>
    %58 = math.tanh %57 : vector<8x128xf32>
    %59 = vector.extract_strided_slice %44 {offsets = [0, 384], sizes = [8, 128], strides = [1, 1]} : vector<8x512xf32> to vector<8x128xf32>
    %60 = arith.negf %59 : vector<8x128xf32>
    %61 = math.exp %60 : vector<8x128xf32>
    %cst_22 = arith.constant 1.000000e+00 : f32
    %62 = vector.broadcast %cst_22 : f32 to vector<8x128xf32>
    %63 = arith.addf %62, %61 : vector<8x128xf32>
    %64 = arith.divf %62, %63 : vector<8x128xf32>
    %65 = arith.mulf %56, %38 : vector<8x128xf32>
    %66 = arith.mulf %50, %58 : vector<8x128xf32>
    %67 = arith.addf %65, %66 : vector<8x128xf32>
    %68 = math.tanh %67 : vector<8x128xf32>
    %69 = arith.mulf %64, %68 : vector<8x128xf32>
    %c8 = arith.constant 8 : index
    %c0_23 = arith.constant 0 : index
    %70 = vector.load %arg11[%c8, %c0_23] : memref<64x128xf32, #tpu.memory_space<vmem>>, vector<8x128xf32>
    tpu.vector_store %arg11[%c8, %c0_23], %69 {strides = array<i32>} : memref<64x128xf32, #tpu.memory_space<vmem>>, vector<8x128xf32>,
    %71 = vector.extract_strided_slice %9 {offsets = [16, 0], sizes = [8, 512], strides = [1, 1]} : vector<64x512xf32> to vector<8x512xf32>
    %cst_24 = arith.constant dense<0.000000e+00> : vector<8x512xf32>
    %72 = tpu.matmul %69, %10, %cst_24 {dimension_numbers = #tpu.dot_dimension_numbers<[1], [0], [0], [1], [0, 0, 1, 1], [], []>} : vector<8x128xf32>, vector<128x512xf32>, vector<8x512xf32> -> vector<8x512xf32>
    %73 = arith.addf %71, %72 : vector<8x512xf32>
    %74 = vector.extract_strided_slice %73 {offsets = [0, 0], sizes = [8, 128], strides = [1, 1]} : vector<8x512xf32> to vector<8x128xf32>
    %75 = arith.negf %74 : vector<8x128xf32>
    %76 = math.exp %75 : vector<8x128xf32>
    %cst_25 = arith.constant 1.000000e+00 : f32
    %77 = vector.broadcast %cst_25 : f32 to vector<8x128xf32>
    %78 = arith.addf %77, %76 : vector<8x128xf32>
    %79 = arith.divf %77, %78 : vector<8x128xf32>
    %80 = vector.extract_strided_slice %73 {offsets = [0, 128], sizes = [8, 128], strides = [1, 1]} : vector<8x512xf32> to vector<8x128xf32>
    %81 = arith.negf %80 : vector<8x128xf32>
    %82 = math.exp %81 : vector<8x128xf32>
    %cst_26 = arith.constant 1.000000e+00 : f32
    %83 = vector.broadcast %cst_26 : f32 to vector<8x128xf32>
    %84 = arith.addf %83, %82 : vector<8x128xf32>
    %85 = arith.divf %83, %84 : vector<8x128xf32>
    %86 = vector.extract_strided_slice %73 {offsets = [0, 256], sizes = [8, 128], strides = [1, 1]} : vector<8x512xf32> to vector<8x128xf32>
    %87 = math.tanh %86 : vector<8x128xf32>
    %88 = vector.extract_strided_slice %73 {offsets = [0, 384], sizes = [8, 128], strides = [1, 1]} : vector<8x512xf32> to vector<8x128xf32>
    %89 = arith.negf %88 : vector<8x128xf32>
    %90 = math.exp %89 : vector<8x128xf32>
    %cst_27 = arith.constant 1.000000e+00 : f32
    %91 = vector.broadcast %cst_27 : f32 to vector<8x128xf32>
    %92 = arith.addf %91, %90 : vector<8x128xf32>
    %93 = arith.divf %91, %92 : vector<8x128xf32>
    %94 = arith.mulf %85, %67 : vector<8x128xf32>
    %95 = arith.mulf %79, %87 : vector<8x128xf32>
    %96 = arith.addf %94, %95 : vector<8x128xf32>
    %97 = math.tanh %96 : vector<8x128xf32>
    %98 = arith.mulf %93, %97 : vector<8x128xf32>
    %c16 = arith.constant 16 : index
    %c0_28 = arith.constant 0 : index
    %99 = vector.load %arg11[%c16, %c0_28] : memref<64x128xf32, #tpu.memory_space<vmem>>, vector<8x128xf32>
    tpu.vector_store %arg11[%c16, %c0_28], %98 {strides = array<i32>} : memref<64x128xf32, #tpu.memory_space<vmem>>, vector<8x128xf32>,
    %100 = vector.extract_strided_slice %9 {offsets = [24, 0], sizes = [8, 512], strides = [1, 1]} : vector<64x512xf32> to vector<8x512xf32>
    %cst_29 = arith.constant dense<0.000000e+00> : vector<8x512xf32>
    %101 = tpu.matmul %98, %10, %cst_29 {dimension_numbers = #tpu.dot_dimension_numbers<[1], [0], [0], [1], [0, 0, 1, 1], [], []>} : vector<8x128xf32>, vector<128x512xf32>, vector<8x512xf32> -> vector<8x512xf32>
    %102 = arith.addf %100, %101 : vector<8x512xf32>
    %103 = vector.extract_strided_slice %102 {offsets = [0, 0], sizes = [8, 128], strides = [1, 1]} : vector<8x512xf32> to vector<8x128xf32>
    %104 = arith.negf %103 : vector<8x128xf32>
    %105 = math.exp %104 : vector<8x128xf32>
    %cst_30 = arith.constant 1.000000e+00 : f32
    %106 = vector.broadcast %cst_30 : f32 to vector<8x128xf32>
    %107 = arith.addf %106, %105 : vector<8x128xf32>
    %108 = arith.divf %106, %107 : vector<8x128xf32>
    %109 = vector.extract_strided_slice %102 {offsets = [0, 128], sizes = [8, 128], strides = [1, 1]} : vector<8x512xf32> to vector<8x128xf32>
    %110 = arith.negf %109 : vector<8x128xf32>
    %111 = math.exp %110 : vector<8x128xf32>
    %cst_31 = arith.constant 1.000000e+00 : f32
    %112 = vector.broadcast %cst_31 : f32 to vector<8x128xf32>
    %113 = arith.addf %112, %111 : vector<8x128xf32>
    %114 = arith.divf %112, %113 : vector<8x128xf32>
    %115 = vector.extract_strided_slice %102 {offsets = [0, 256], sizes = [8, 128], strides = [1, 1]} : vector<8x512xf32> to vector<8x128xf32>
    %116 = math.tanh %115 : vector<8x128xf32>
    %117 = vector.extract_strided_slice %102 {offsets = [0, 384], sizes = [8, 128], strides = [1, 1]} : vector<8x512xf32> to vector<8x128xf32>
    %118 = arith.negf %117 : vector<8x128xf32>
    %119 = math.exp %118 : vector<8x128xf32>
    %cst_32 = arith.constant 1.000000e+00 : f32
    %120 = vector.broadcast %cst_32 : f32 to vector<8x128xf32>
    %121 = arith.addf %120, %119 : vector<8x128xf32>
    %122 = arith.divf %120, %121 : vector<8x128xf32>
    %123 = arith.mulf %114, %96 : vector<8x128xf32>
    %124 = arith.mulf %108, %116 : vector<8x128xf32>
    %125 = arith.addf %123, %124 : vector<8x128xf32>
    %126 = math.tanh %125 : vector<8x128xf32>
    %127 = arith.mulf %122, %126 : vector<8x128xf32>
    %c24 = arith.constant 24 : index
    %c0_33 = arith.constant 0 : index
    %128 = vector.load %arg11[%c24, %c0_33] : memref<64x128xf32, #tpu.memory_space<vmem>>, vector<8x128xf32>
    tpu.vector_store %arg11[%c24, %c0_33], %127 {strides = array<i32>} : memref<64x128xf32, #tpu.memory_space<vmem>>, vector<8x128xf32>,
    %129 = vector.extract_strided_slice %9 {offsets = [32, 0], sizes = [8, 512], strides = [1, 1]} : vector<64x512xf32> to vector<8x512xf32>
    %cst_34 = arith.constant dense<0.000000e+00> : vector<8x512xf32>
    %130 = tpu.matmul %127, %10, %cst_34 {dimension_numbers = #tpu.dot_dimension_numbers<[1], [0], [0], [1], [0, 0, 1, 1], [], []>} : vector<8x128xf32>, vector<128x512xf32>, vector<8x512xf32> -> vector<8x512xf32>
    %131 = arith.addf %129, %130 : vector<8x512xf32>
    %132 = vector.extract_strided_slice %131 {offsets = [0, 0], sizes = [8, 128], strides = [1, 1]} : vector<8x512xf32> to vector<8x128xf32>
    %133 = arith.negf %132 : vector<8x128xf32>
    %134 = math.exp %133 : vector<8x128xf32>
    %cst_35 = arith.constant 1.000000e+00 : f32
    %135 = vector.broadcast %cst_35 : f32 to vector<8x128xf32>
    %136 = arith.addf %135, %134 : vector<8x128xf32>
    %137 = arith.divf %135, %136 : vector<8x128xf32>
    %138 = vector.extract_strided_slice %131 {offsets = [0, 128], sizes = [8, 128], strides = [1, 1]} : vector<8x512xf32> to vector<8x128xf32>
    %139 = arith.negf %138 : vector<8x128xf32>
    %140 = math.exp %139 : vector<8x128xf32>
    %cst_36 = arith.constant 1.000000e+00 : f32
    %141 = vector.broadcast %cst_36 : f32 to vector<8x128xf32>
    %142 = arith.addf %141, %140 : vector<8x128xf32>
    %143 = arith.divf %141, %142 : vector<8x128xf32>
    %144 = vector.extract_strided_slice %131 {offsets = [0, 256], sizes = [8, 128], strides = [1, 1]} : vector<8x512xf32> to vector<8x128xf32>
    %145 = math.tanh %144 : vector<8x128xf32>
    %146 = vector.extract_strided_slice %131 {offsets = [0, 384], sizes = [8, 128], strides = [1, 1]} : vector<8x512xf32> to vector<8x128xf32>
    %147 = arith.negf %146 : vector<8x128xf32>
    %148 = math.exp %147 : vector<8x128xf32>
    %cst_37 = arith.constant 1.000000e+00 : f32
    %149 = vector.broadcast %cst_37 : f32 to vector<8x128xf32>
    %150 = arith.addf %149, %148 : vector<8x128xf32>
    %151 = arith.divf %149, %150 : vector<8x128xf32>
    %152 = arith.mulf %143, %125 : vector<8x128xf32>
    %153 = arith.mulf %137, %145 : vector<8x128xf32>
    %154 = arith.addf %152, %153 : vector<8x128xf32>
    %155 = math.tanh %154 : vector<8x128xf32>
    %156 = arith.mulf %151, %155 : vector<8x128xf32>
    %c32 = arith.constant 32 : index
    %c0_38 = arith.constant 0 : index
    %157 = vector.load %arg11[%c32, %c0_38] : memref<64x128xf32, #tpu.memory_space<vmem>>, vector<8x128xf32>
    tpu.vector_store %arg11[%c32, %c0_38], %156 {strides = array<i32>} : memref<64x128xf32, #tpu.memory_space<vmem>>, vector<8x128xf32>,
    %158 = vector.extract_strided_slice %9 {offsets = [40, 0], sizes = [8, 512], strides = [1, 1]} : vector<64x512xf32> to vector<8x512xf32>
    %cst_39 = arith.constant dense<0.000000e+00> : vector<8x512xf32>
    %159 = tpu.matmul %156, %10, %cst_39 {dimension_numbers = #tpu.dot_dimension_numbers<[1], [0], [0], [1], [0, 0, 1, 1], [], []>} : vector<8x128xf32>, vector<128x512xf32>, vector<8x512xf32> -> vector<8x512xf32>
    %160 = arith.addf %158, %159 : vector<8x512xf32>
    %161 = vector.extract_strided_slice %160 {offsets = [0, 0], sizes = [8, 128], strides = [1, 1]} : vector<8x512xf32> to vector<8x128xf32>
    %162 = arith.negf %161 : vector<8x128xf32>
    %163 = math.exp %162 : vector<8x128xf32>
    %cst_40 = arith.constant 1.000000e+00 : f32
    %164 = vector.broadcast %cst_40 : f32 to vector<8x128xf32>
    %165 = arith.addf %164, %163 : vector<8x128xf32>
    %166 = arith.divf %164, %165 : vector<8x128xf32>
    %167 = vector.extract_strided_slice %160 {offsets = [0, 128], sizes = [8, 128], strides = [1, 1]} : vector<8x512xf32> to vector<8x128xf32>
    %168 = arith.negf %167 : vector<8x128xf32>
    %169 = math.exp %168 : vector<8x128xf32>
    %cst_41 = arith.constant 1.000000e+00 : f32
    %170 = vector.broadcast %cst_41 : f32 to vector<8x128xf32>
    %171 = arith.addf %170, %169 : vector<8x128xf32>
    %172 = arith.divf %170, %171 : vector<8x128xf32>
    %173 = vector.extract_strided_slice %160 {offsets = [0, 256], sizes = [8, 128], strides = [1, 1]} : vector<8x512xf32> to vector<8x128xf32>
    %174 = math.tanh %173 : vector<8x128xf32>
    %175 = vector.extract_strided_slice %160 {offsets = [0, 384], sizes = [8, 128], strides = [1, 1]} : vector<8x512xf32> to vector<8x128xf32>
    %176 = arith.negf %175 : vector<8x128xf32>
    %177 = math.exp %176 : vector<8x128xf32>
    %cst_42 = arith.constant 1.000000e+00 : f32
    %178 = vector.broadcast %cst_42 : f32 to vector<8x128xf32>
    %179 = arith.addf %178, %177 : vector<8x128xf32>
    %180 = arith.divf %178, %179 : vector<8x128xf32>
    %181 = arith.mulf %172, %154 : vector<8x128xf32>
    %182 = arith.mulf %166, %174 : vector<8x128xf32>
    %183 = arith.addf %181, %182 : vector<8x128xf32>
    %184 = math.tanh %183 : vector<8x128xf32>
    %185 = arith.mulf %180, %184 : vector<8x128xf32>
    %c40 = arith.constant 40 : index
    %c0_43 = arith.constant 0 : index
    %186 = vector.load %arg11[%c40, %c0_43] : memref<64x128xf32, #tpu.memory_space<vmem>>, vector<8x128xf32>
    tpu.vector_store %arg11[%c40, %c0_43], %185 {strides = array<i32>} : memref<64x128xf32, #tpu.memory_space<vmem>>, vector<8x128xf32>,
    %187 = vector.extract_strided_slice %9 {offsets = [48, 0], sizes = [8, 512], strides = [1, 1]} : vector<64x512xf32> to vector<8x512xf32>
    %cst_44 = arith.constant dense<0.000000e+00> : vector<8x512xf32>
    %188 = tpu.matmul %185, %10, %cst_44 {dimension_numbers = #tpu.dot_dimension_numbers<[1], [0], [0], [1], [0, 0, 1, 1], [], []>} : vector<8x128xf32>, vector<128x512xf32>, vector<8x512xf32> -> vector<8x512xf32>
    %189 = arith.addf %187, %188 : vector<8x512xf32>
    %190 = vector.extract_strided_slice %189 {offsets = [0, 0], sizes = [8, 128], strides = [1, 1]} : vector<8x512xf32> to vector<8x128xf32>
    %191 = arith.negf %190 : vector<8x128xf32>
    %192 = math.exp %191 : vector<8x128xf32>
    %cst_45 = arith.constant 1.000000e+00 : f32
    %193 = vector.broadcast %cst_45 : f32 to vector<8x128xf32>
    %194 = arith.addf %193, %192 : vector<8x128xf32>
    %195 = arith.divf %193, %194 : vector<8x128xf32>
    %196 = vector.extract_strided_slice %189 {offsets = [0, 128], sizes = [8, 128], strides = [1, 1]} : vector<8x512xf32> to vector<8x128xf32>
    %197 = arith.negf %196 : vector<8x128xf32>
    %198 = math.exp %197 : vector<8x128xf32>
    %cst_46 = arith.constant 1.000000e+00 : f32
    %199 = vector.broadcast %cst_46 : f32 to vector<8x128xf32>
    %200 = arith.addf %199, %198 : vector<8x128xf32>
    %201 = arith.divf %199, %200 : vector<8x128xf32>
    %202 = vector.extract_strided_slice %189 {offsets = [0, 256], sizes = [8, 128], strides = [1, 1]} : vector<8x512xf32> to vector<8x128xf32>
    %203 = math.tanh %202 : vector<8x128xf32>
    %204 = vector.extract_strided_slice %189 {offsets = [0, 384], sizes = [8, 128], strides = [1, 1]} : vector<8x512xf32> to vector<8x128xf32>
    %205 = arith.negf %204 : vector<8x128xf32>
    %206 = math.exp %205 : vector<8x128xf32>
    %cst_47 = arith.constant 1.000000e+00 : f32
    %207 = vector.broadcast %cst_47 : f32 to vector<8x128xf32>
    %208 = arith.addf %207, %206 : vector<8x128xf32>
    %209 = arith.divf %207, %208 : vector<8x128xf32>
    %210 = arith.mulf %201, %183 : vector<8x128xf32>
    %211 = arith.mulf %195, %203 : vector<8x128xf32>
    %212 = arith.addf %210, %211 : vector<8x128xf32>
    %213 = math.tanh %212 : vector<8x128xf32>
    %214 = arith.mulf %209, %213 : vector<8x128xf32>
    %c48 = arith.constant 48 : index
    %c0_48 = arith.constant 0 : index
    %215 = vector.load %arg11[%c48, %c0_48] : memref<64x128xf32, #tpu.memory_space<vmem>>, vector<8x128xf32>
    tpu.vector_store %arg11[%c48, %c0_48], %214 {strides = array<i32>} : memref<64x128xf32, #tpu.memory_space<vmem>>, vector<8x128xf32>,
    %216 = vector.extract_strided_slice %9 {offsets = [56, 0], sizes = [8, 512], strides = [1, 1]} : vector<64x512xf32> to vector<8x512xf32>
    %cst_49 = arith.constant dense<0.000000e+00> : vector<8x512xf32>
    %217 = tpu.matmul %214, %10, %cst_49 {dimension_numbers = #tpu.dot_dimension_numbers<[1], [0], [0], [1], [0, 0, 1, 1], [], []>} : vector<8x128xf32>, vector<128x512xf32>, vector<8x512xf32> -> vector<8x512xf32>
    %218 = arith.addf %216, %217 : vector<8x512xf32>
    %219 = vector.extract_strided_slice %218 {offsets = [0, 0], sizes = [8, 128], strides = [1, 1]} : vector<8x512xf32> to vector<8x128xf32>
    %220 = arith.negf %219 : vector<8x128xf32>
    %221 = math.exp %220 : vector<8x128xf32>
    %cst_50 = arith.constant 1.000000e+00 : f32
    %222 = vector.broadcast %cst_50 : f32 to vector<8x128xf32>
    %223 = arith.addf %222, %221 : vector<8x128xf32>
    %224 = arith.divf %222, %223 : vector<8x128xf32>
    %225 = vector.extract_strided_slice %218 {offsets = [0, 128], sizes = [8, 128], strides = [1, 1]} : vector<8x512xf32> to vector<8x128xf32>
    %226 = arith.negf %225 : vector<8x128xf32>
    %227 = math.exp %226 : vector<8x128xf32>
    %cst_51 = arith.constant 1.000000e+00 : f32
    %228 = vector.broadcast %cst_51 : f32 to vector<8x128xf32>
    %229 = arith.addf %228, %227 : vector<8x128xf32>
    %230 = arith.divf %228, %229 : vector<8x128xf32>
    %231 = vector.extract_strided_slice %218 {offsets = [0, 256], sizes = [8, 128], strides = [1, 1]} : vector<8x512xf32> to vector<8x128xf32>
    %232 = math.tanh %231 : vector<8x128xf32>
    %233 = vector.extract_strided_slice %218 {offsets = [0, 384], sizes = [8, 128], strides = [1, 1]} : vector<8x512xf32> to vector<8x128xf32>
    %234 = arith.negf %233 : vector<8x128xf32>
    %235 = math.exp %234 : vector<8x128xf32>
    %cst_52 = arith.constant 1.000000e+00 : f32
    %236 = vector.broadcast %cst_52 : f32 to vector<8x128xf32>
    %237 = arith.addf %236, %235 : vector<8x128xf32>
    %238 = arith.divf %236, %237 : vector<8x128xf32>
    %239 = arith.mulf %230, %212 : vector<8x128xf32>
    %240 = arith.mulf %224, %232 : vector<8x128xf32>
    %241 = arith.addf %239, %240 : vector<8x128xf32>
    %242 = math.tanh %241 : vector<8x128xf32>
    %243 = arith.mulf %238, %242 : vector<8x128xf32>
    %c56 = arith.constant 56 : index
    %c0_53 = arith.constant 0 : index
    %244 = vector.load %arg11[%c56, %c0_53] : memref<64x128xf32, #tpu.memory_space<vmem>>, vector<8x128xf32>
    tpu.vector_store %arg11[%c56, %c0_53], %243 {strides = array<i32>} : memref<64x128xf32, #tpu.memory_space<vmem>>, vector<8x128xf32>,
    %c0_54 = arith.constant 0 : index
    %c0_55 = arith.constant 0 : index
    %245 = vector.load %arg9[%c0_54, %c0_55] : memref<8x128xf32, #tpu.memory_space<vmem>>, vector<8x128xf32>
    tpu.vector_store %arg9[%c0_54, %c0_55], %243 {strides = array<i32>} : memref<8x128xf32, #tpu.memory_space<vmem>>, vector<8x128xf32>,
    %c0_56 = arith.constant 0 : index
    %c0_57 = arith.constant 0 : index
    %246 = vector.load %arg10[%c0_56, %c0_57] : memref<8x128xf32, #tpu.memory_space<vmem>>, vector<8x128xf32>
    tpu.vector_store %arg10[%c0_56, %c0_57], %241 {strides = array<i32>} : memref<8x128xf32, #tpu.memory_space<vmem>>, vector<8x128xf32>,
    %c0_58 = arith.constant 0 : index
    %c0_59 = arith.constant 0 : index
    %247 = vector.load %arg11[%c0_58, %c0_59] : memref<64x128xf32, #tpu.memory_space<vmem>>, vector<64x128xf32>
    %c0_60 = arith.constant 0 : index
    %c0_61 = arith.constant 0 : index
    %248 = vector.load %arg6[%c0_60, %c0_61] : memref<128x128xf32, #tpu.memory_space<vmem>>, vector<128x128xf32>
    %cst_62 = arith.constant dense<0.000000e+00> : vector<64x128xf32>
    %249 = tpu.matmul %247, %248, %cst_62 {dimension_numbers = #tpu.dot_dimension_numbers<[1], [0], [0], [1], [0, 0, 1, 1], [], []>} : vector<64x128xf32>, vector<128x128xf32>, vector<64x128xf32> -> vector<64x128xf32>
    %c0_63 = arith.constant 0 : index
    %c0_64 = arith.constant 0 : index
    %250 = vector.load %arg7[%c0_63, %c0_64] : memref<1x128xf32, #tpu.memory_space<vmem>>, vector<1x128xf32>
    %251 = vector.broadcast %250 : vector<1x128xf32> to vector<64x128xf32>
    %252 = arith.addf %249, %251 : vector<64x128xf32>
    %cst_65 = arith.constant dense<0xFF800000> : vector<64xf32>
    %253 = vector.multi_reduction <maximumf>, %252, %cst_65 [1] : vector<64x128xf32> to vector<64xf32>
    %254 = vector.shape_cast %253 : vector<64xf32> to vector<64x1xf32>
    %255 = vector.broadcast %254 : vector<64x1xf32> to vector<64x128xf32>
    %256 = arith.subf %252, %255 : vector<64x128xf32>
    %257 = math.exp %256 : vector<64x128xf32>
    %cst_66 = arith.constant dense<0.000000e+00> : vector<64xf32>
    %258 = vector.multi_reduction <add>, %257, %cst_66 [1] : vector<64x128xf32> to vector<64xf32>
    %259 = vector.shape_cast %258 : vector<64xf32> to vector<64x1xf32>
    %260 = math.log %259 : vector<64x1xf32>
    %261 = vector.broadcast %260 : vector<64x1xf32> to vector<64x128xf32>
    %262 = arith.subf %256, %261 : vector<64x128xf32>
    %263 = vector.extract_strided_slice %262 {offsets = [0, 0], sizes = [8, 128], strides = [1, 1]} : vector<64x128xf32> to vector<8x128xf32>
    %c0_67 = arith.constant 0 : index
    %c0_68 = arith.constant 0 : index
    %264 = vector.load %arg8[%c0_67, %c0_68] : memref<8x1024xf32, #tpu.memory_space<vmem>>, vector<8x128xf32>
    tpu.vector_store %arg8[%c0_67, %c0_68], %263 {strides = array<i32>} : memref<8x1024xf32, #tpu.memory_space<vmem>>, vector<8x128xf32>,
    %265 = vector.extract_strided_slice %262 {offsets = [8, 0], sizes = [8, 128], strides = [1, 1]} : vector<64x128xf32> to vector<8x128xf32>
    %c0_69 = arith.constant 0 : index
    %c128 = arith.constant 128 : index
    %266 = vector.load %arg8[%c0_69, %c128] : memref<8x1024xf32, #tpu.memory_space<vmem>>, vector<8x128xf32>
    tpu.vector_store %arg8[%c0_69, %c128], %265 {strides = array<i32>} : memref<8x1024xf32, #tpu.memory_space<vmem>>, vector<8x128xf32>,
    %267 = vector.extract_strided_slice %262 {offsets = [16, 0], sizes = [8, 128], strides = [1, 1]} : vector<64x128xf32> to vector<8x128xf32>
    %c0_70 = arith.constant 0 : index
    %c256 = arith.constant 256 : index
    %268 = vector.load %arg8[%c0_70, %c256] : memref<8x1024xf32, #tpu.memory_space<vmem>>, vector<8x128xf32>
    tpu.vector_store %arg8[%c0_70, %c256], %267 {strides = array<i32>} : memref<8x1024xf32, #tpu.memory_space<vmem>>, vector<8x128xf32>,
    %269 = vector.extract_strided_slice %262 {offsets = [24, 0], sizes = [8, 128], strides = [1, 1]} : vector<64x128xf32> to vector<8x128xf32>
    %c0_71 = arith.constant 0 : index
    %c384 = arith.constant 384 : index
    %270 = vector.load %arg8[%c0_71, %c384] : memref<8x1024xf32, #tpu.memory_space<vmem>>, vector<8x128xf32>
    tpu.vector_store %arg8[%c0_71, %c384], %269 {strides = array<i32>} : memref<8x1024xf32, #tpu.memory_space<vmem>>, vector<8x128xf32>,
    %271 = vector.extract_strided_slice %262 {offsets = [32, 0], sizes = [8, 128], strides = [1, 1]} : vector<64x128xf32> to vector<8x128xf32>
    %c0_72 = arith.constant 0 : index
    %c512 = arith.constant 512 : index
    %272 = vector.load %arg8[%c0_72, %c512] : memref<8x1024xf32, #tpu.memory_space<vmem>>, vector<8x128xf32>
    tpu.vector_store %arg8[%c0_72, %c512], %271 {strides = array<i32>} : memref<8x1024xf32, #tpu.memory_space<vmem>>, vector<8x128xf32>,
    %273 = vector.extract_strided_slice %262 {offsets = [40, 0], sizes = [8, 128], strides = [1, 1]} : vector<64x128xf32> to vector<8x128xf32>
    %c0_73 = arith.constant 0 : index
    %c640 = arith.constant 640 : index
    %274 = vector.load %arg8[%c0_73, %c640] : memref<8x1024xf32, #tpu.memory_space<vmem>>, vector<8x128xf32>
    tpu.vector_store %arg8[%c0_73, %c640], %273 {strides = array<i32>} : memref<8x1024xf32, #tpu.memory_space<vmem>>, vector<8x128xf32>,
    %275 = vector.extract_strided_slice %262 {offsets = [48, 0], sizes = [8, 128], strides = [1, 1]} : vector<64x128xf32> to vector<8x128xf32>
    %c0_74 = arith.constant 0 : index
    %c768 = arith.constant 768 : index
    %276 = vector.load %arg8[%c0_74, %c768] : memref<8x1024xf32, #tpu.memory_space<vmem>>, vector<8x128xf32>
    tpu.vector_store %arg8[%c0_74, %c768], %275 {strides = array<i32>} : memref<8x1024xf32, #tpu.memory_space<vmem>>, vector<8x128xf32>,
    %277 = vector.extract_strided_slice %262 {offsets = [56, 0], sizes = [8, 128], strides = [1, 1]} : vector<64x128xf32> to vector<8x128xf32>
    %c0_75 = arith.constant 0 : index
    %c896 = arith.constant 896 : index
    %278 = vector.load %arg8[%c0_75, %c896] : memref<8x1024xf32, #tpu.memory_space<vmem>>, vector<8x128xf32>
    tpu.vector_store %arg8[%c0_75, %c896], %277 {strides = array<i32>} : memref<8x1024xf32, #tpu.memory_space<vmem>>, vector<8x128xf32>,
    return
  }
  func.func @transform_0(%arg0: i32, %arg1: i32) -> (i32, i32, i32) {
    %c0_i32 = arith.constant 0 : i32
    %c0_i32_0 = arith.constant 0 : i32
    return %arg1, %arg0, %c0_i32 : i32, i32, i32
  }
  func.func @transform_1(%arg0: i32, %arg1: i32) -> (i32, i32) {
    %c0_i32 = arith.constant 0 : i32
    %c0_i32_0 = arith.constant 0 : i32
    %c0_i32_1 = arith.constant 0 : i32
    return %c0_i32, %c0_i32_0 : i32, i32
  }
  func.func @transform_2(%arg0: i32, %arg1: i32) -> (i32, i32) {
    %c0_i32 = arith.constant 0 : i32
    %c0_i32_0 = arith.constant 0 : i32
    %c0_i32_1 = arith.constant 0 : i32
    return %c0_i32, %c0_i32_0 : i32, i32
  }
  func.func @transform_3(%arg0: i32, %arg1: i32) -> (i32, i32) {
    %c0_i32 = arith.constant 0 : i32
    %c0_i32_0 = arith.constant 0 : i32
    %c0_i32_1 = arith.constant 0 : i32
    return %c0_i32, %c0_i32_0 : i32, i32
  }
  func.func @transform_4(%arg0: i32, %arg1: i32) -> (i32, i32) {
    %c0_i32 = arith.constant 0 : i32
    %c0_i32_0 = arith.constant 0 : i32
    %c0_i32_1 = arith.constant 0 : i32
    return %c0_i32, %c0_i32_0 : i32, i32
  }
  func.func @transform_5(%arg0: i32, %arg1: i32) -> (i32, i32) {
    %c0_i32 = arith.constant 0 : i32
    %c0_i32_0 = arith.constant 0 : i32
    %c0_i32_1 = arith.constant 0 : i32
    return %c0_i32, %c0_i32_0 : i32, i32
  }
  func.func @transform_6(%arg0: i32, %arg1: i32) -> (i32, i32) {
    %c0_i32 = arith.constant 0 : i32
    return %arg0, %arg1 : i32, i32
  }
}

</mosaic_0001>

<bundles_post_ra>
// kernel: rnn_forward.1
= control target key start
LH: loop header
LB: loop body
LE: loop exit
PB: predicated region body
PF: predicated region fallthrough
CT: control target
= control target key end

     0   :  { %v2884_v3 = vmov 0.0   ;;  %vm75_vm0 = vcmask 261120   ;;  %s3778_s1 = inlined_call_operand.vmem [shape: f32[32,512], index: 1, kind: input, shape index: {}]   ;;  %s3779_s2 = inlined_call_operand.vmem [shape: f32[128,512], index: 2, kind: input, shape index: {}]   ;;  %s3780_s0 = inlined_call_operand.vmem [shape: f32[8,8,32], index: 0, kind: input, shape index: {}]   ;;  %s3781_s3 = inlined_call_operand.vmem [shape: f32[1,512], index: 3, kind: input, shape index: {}]   ;;  %s3782_s4 = inlined_call_operand.vmem [shape: f32[128,128], index: 4, kind: input, shape index: {}]   ;;  %s3783_s5 = inlined_call_operand.vmem [shape: f32[1,128], index: 5, kind: input, shape index: {}]   ;;  %s3784_s6 = inlined_call_operand.vmem [shape: f32[8,1024], index: 6, kind: output, shape index: {}]  }
   0x1   :  { %v40_v0 = vld [vmem:[%s3778_s1 + $0x18] sm:$0xff]  ;;  %v39_v2 = vld [vmem:[%s3778_s1 + $0x10] sm:$0xff]  ;;  %277 = vmatprep.mubr.f32.mxu1 %v2884_v3  ;;  %164 = vmatprep.mubr.f32.mxu0 %v2884_v3  ;;  %v327_v12 = vld [vmem:[%s3779_s2 + $0x8] sm:$0xff] }
   0x2   :  { %v44_v1 = vld [vmem:[%s3778_s1 + $0x38] sm:$0xff]  ;;  %v43_v5 = vld [vmem:[%s3778_s1 + $0x30] sm:$0xff]  ;;  %v331_v13 = vld [vmem:[%s3779_s2 + $0x28] sm:$0xff] }
   0x3   :  { %v2107_v4 = vpack.c.bf16 %v44_v1, %v40_v0  ;;  %v48_v6 = vld [vmem:[%s3778_s1 + $0x58] sm:$0xff]  ;;  %v2109_v8 = vpack.c.bf16 %v43_v5, %v39_v2  ;;  %v47_v10 = vld [vmem:[%s3778_s1 + $0x50] sm:$0xff]  ;;  %v2952_v15 = vpack.c.bf16 %v331_v13, %v327_v12  ;;  %v326_v16 = vld [vmem:[%s3779_s2] sm:$0xff] }
   0x4   :  { %v52_v7 = vld [vmem:[%s3778_s1 + $0x78] sm:$0xff]  ;;  %v51_v11 = vld [vmem:[%s3778_s1 + $0x70] sm:$0xff]  ;;  %v330_v17 = vld [vmem:[%s3779_s2 + $0x20] sm:$0xff] }
   0x5   :  { %v2111_v9 = vpack.c.bf16 %v52_v7, %v48_v6  ;;  %2108 = vmatprep.subr.bf16.mxu1 %v2107_v4  ;;  %v2113_v14 = vpack.c.bf16 %v51_v11, %v47_v10  ;;  %v335_v18 = vld [vmem:[%s3779_s2 + $0x48] sm:$0xff]  ;;  %v2969_v20 = vld [vmem:[%s3780_s0] sm:$0xff]  ;;  %v2971_v21 = vpack.c.bf16 %v330_v17, %v326_v16  ;;  %v3031_v40 = vld [vmem:[%s3780_s0 + $0x10] sm:$0xff] }
   0x6   :  { %2110 = vmatpush1.bf16.msra.mxu1 %v2109_v8  ;;  %v339_v19 = vld [vmem:[%s3779_s2 + $0x68] sm:$0xff]  ;;  %v334_v23 = vld [vmem:[%s3779_s2 + $0x40] sm:$0xff]  ;;  %v3071_v53 = vld [vmem:[%s3780_s0 + $0x18] sm:$0xff] }
   0x7   :  { %2112 = vmatprep.subr.bf16.mxu1 %v2111_v9  ;;  %v2974_v22 = vpack.c.bf16 %v339_v19, %v335_v18  ;;  %v338_v24 = vld [vmem:[%s3779_s2 + $0x60] sm:$0xff]  ;;  %v343_v25 = vld [vmem:[%s3779_s2 + $0x88] sm:$0xff]  ;;  %v35_v11 = vld [vmem:[%s3780_s0 + $0x30] sm:$0xff] }
   0x8   :  { %v347_v26 = vld [vmem:[%s3779_s2 + $0xa8] sm:$0xff]  ;;  %v2997_v28 = vpack.c.bf16 %v338_v24, %v334_v23  ;;  %v342_v29 = vld [vmem:[%s3779_s2 + $0x80] sm:$0xff]  ;;  %v329_v17 = vld [vmem:[%s3779_s2 + $0x18] sm:$0xff] }
   0x9   :  { %v2993_v27 = vld [vmem:[%s3780_s0 + $0x8] sm:$0xff]  ;;  %v346_v30 = vld [vmem:[%s3779_s2 + $0xa0] sm:$0xff]  ;;  %v3009_v32 = vpack.c.bf16 %v347_v26, %v343_v25  ;;  %v333_v18 = vld [vmem:[%s3779_s2 + $0x38] sm:$0xff] }
   0xa   :  { %2114 = vmatpush1.bf16.msra.mxu1 %v2113_v14  ;;  %v38_v31 = vld [vmem:[%s3778_s1 + $0x8] sm:$0xff]  ;;  %v37_v34 = vld [vmem:[%s3778_s1] sm:$0xff]  ;;  %v3038_v42 = vpack.c.bf16 %v346_v30, %v342_v29  ;;  %v36_v19 = vld [vmem:[%s3780_s0 + $0x38] sm:$0xff]  ;;  %v3191_v23 = vpack.c.bf16 %v333_v18, %v329_v17 }
   0xb   :  { %2116 = vmatprep.subr.bf16.mxu1 %v2952_v15  ;;  %v42_v33 = vld [vmem:[%s3778_s1 + $0x28] sm:$0xff]  ;;  %v41_v35 = vld [vmem:[%s3778_s1 + $0x20] sm:$0xff]  ;;  %v328_v24 = vld [vmem:[%s3779_s2 + $0x10] sm:$0xff] }
   0xc   :  { %v351_v36 = vld [vmem:[%s3779_s2 + $0xc8] sm:$0xff]  ;;  %v2099_v38 = vpack.c.bf16 %v42_v33, %v38_v31  ;;  %v2101_v39 = vpack.c.bf16 %v41_v35, %v37_v34  ;;  %v45_v44 = vld [vmem:[%s3778_s1 + $0x40] sm:$0xff]  ;;  %v332_v25 = vld [vmem:[%s3779_s2 + $0x30] sm:$0xff] }
   0xd   :  { %1998 = vmatmul.mubr.msk.f32.vlgmr.msra.gmra.mrb[0].mxu1 %vm75_vm0, %v2969_v20  ;;  %v355_v37 = vld [vmem:[%s3779_s2 + $0xe8] sm:$0xff]  ;;  %v49_v45 = vld [vmem:[%s3778_s1 + $0x60] sm:$0xff]  ;;  %v337_v26 = vld [vmem:[%s3779_s2 + $0x58] sm:$0xff]  ;;  %v3213_v29 = vpack.c.bf16 %v332_v25, %v328_v24 }
   0xe   :  { %2118 = vmatpush1.bf16.msra.mxu1 %v2971_v21  ;;  %283 = vmatprep.mubr.f32.mxu1 %v2884_v3  ;;  %v46_v41 = vld [vmem:[%s3778_s1 + $0x48] sm:$0xff]  ;;  %v3050_v46 = vpack.c.bf16 %v355_v37, %v351_v36  ;;  %v350_v47 = vld [vmem:[%s3779_s2 + $0xc0] sm:$0xff]  ;;  %v2105_v52 = vpack.c.bf16 %v49_v45, %v45_v44  ;;  %v336_v31 = vld [vmem:[%s3779_s2 + $0x50] sm:$0xff] }
   0xf   :  { %2120 = vmatprep.subr.bf16.mxu1 %v2974_v22  ;;  %v50_v43 = vld [vmem:[%s3778_s1 + $0x68] sm:$0xff]  ;;  %v354_v48 = vld [vmem:[%s3779_s2 + $0xe0] sm:$0xff]  ;;  %2100 = vmatprep.subr.bf16.mxu0 %v2099_v38  ;;  %v340_v33 = vld [vmem:[%s3779_s2 + $0x70] sm:$0xff] }
  0x10   :  { %v2103_v49 = vpack.c.bf16 %v50_v43, %v46_v41  ;;  %v359_v50 = vld [vmem:[%s3779_s2 + $0x108] sm:$0xff]  ;;  %2102 = vmatpush1.bf16.msra.mxu0 %v2101_v39  ;;  %v3073_v54 = vpack.c.bf16 %v354_v48, %v350_v47  ;;  %v358_v56 = vld [vmem:[%s3779_s2 + $0x100] sm:$0xff]  ;;  %v345_v34 = vld [vmem:[%s3779_s2 + $0x98] sm:$0xff]  ;;  %v3237_v36 = vpack.c.bf16 %v340_v33, %v336_v31 }
  0x11   :  { %1999 = vmatmul.mubr.msk.f32.gmra.mrb[2].mxu1 %vm75_vm0, %v2993_v27  ;;  %v363_v51 = vld [vmem:[%s3779_s2 + $0x128] sm:$0xff]  ;;  %v362_v57 = vld [vmem:[%s3779_s2 + $0x120] sm:$0xff]  ;;  %v349_v35 = vld [vmem:[%s3779_s2 + $0xb8] sm:$0xff] }
  0x12   :  { %2122 = vmatpush1.bf16.msra.mxu1 %v2997_v28  ;;  %289 = vmatprep.mubr.f32.mxu1 %v2884_v3  ;;  %v3076_v55 = vpack.c.bf16 %v363_v51, %v359_v50  ;;  %v367_v58 = vld [vmem:[%s3779_s2 + $0x148] sm:$0xff]  ;;  %v3098_v60 = vld [vmem:[%s3780_s0 + $0x20] sm:$0xff]  ;;  %v3100_v61 = vpack.c.bf16 %v362_v57, %v358_v56  ;;  %v3241_v37 = vpack.c.bf16 %v349_v35, %v345_v34  ;;  %v344_v38 = vld [vmem:[%s3779_s2 + $0x90] sm:$0xff] }
  0x13   :  { %2124 = vmatprep.subr.bf16.mxu1 %v3009_v32  ;;  %2104 = vmatprep.subr.bf16.mxu0 %v2103_v49  ;;  %v371_v59 = vld [vmem:[%s3779_s2 + $0x168] sm:$0xff]  ;;  %v366_v63 = vld [vmem:[%s3779_s2 + $0x140] sm:$0xff]  ;;  %v348_v39 = vld [vmem:[%s3779_s2 + $0xb0] sm:$0xff] }
  0x14   :  { %2106 = vmatpush1.bf16.msra.mxu0 %v2105_v52  ;;  %v3103_v62 = vpack.c.bf16 %v371_v59, %v367_v58  ;;  %v370_v0 = vld [vmem:[%s3779_s2 + $0x160] sm:$0xff]  ;;  %v375_v1 = vld [vmem:[%s3779_s2 + $0x188] sm:$0xff]  ;;  %v357_v41 = vld [vmem:[%s3779_s2 + $0xf8] sm:$0xff]  ;;  %v3261_v43 = vpack.c.bf16 %v348_v39, %v344_v38 }
  0x15   :  { %2000 = vmatmul.mubr.msk.f32.gmra.mrb[4].mxu1 %vm75_vm0, %v3031_v40  ;;  %2180 = vmatprep.subr.bf16.mxu0 %v2952_v15  ;;  %v379_v2 = vld [vmem:[%s3779_s2 + $0x1a8] sm:$0xff]  ;;  %v3131_v5 = vpack.c.bf16 %v370_v0, %v366_v63  ;;  %v374_v7 = vld [vmem:[%s3779_s2 + $0x180] sm:$0xff]  ;;  %v352_v45 = vld [vmem:[%s3779_s2 + $0xd0] sm:$0xff] }
  0x16   :  { %2126 = vmatpush1.bf16.msra.mxu1 %v3038_v42  ;;  %295 = vmatprep.mubr.f32.mxu1 %v2884_v3  ;;  %v3129_v4 = vld [vmem:[%s3780_s0 + $0x28] sm:$0xff]  ;;  %v3134_v6 = vpack.c.bf16 %v379_v2, %v375_v1  ;;  %v378_v8 = vld [vmem:[%s3779_s2 + $0x1a0] sm:$0xff]  ;;  %v356_v47 = vld [vmem:[%s3779_s2 + $0xf0] sm:$0xff] }
  0x17   :  { %2128 = vmatprep.subr.bf16.mxu1 %v3050_v46  ;;  %1990 = vmatmul.mubr.msk.f32.vlgmr.msra.gmra.mrb[0].mxu0 %vm75_vm0, %v2969_v20  ;;  %v383_v9 = vld [vmem:[%s3779_s2 + $0x1c8] sm:$0xff]  ;;  %v3160_v12 = vpack.c.bf16 %v378_v8, %v374_v7  ;;  %v382_v14 = vld [vmem:[%s3779_s2 + $0x1c0] sm:$0xff]  ;;  %v361_v48 = vld [vmem:[%s3779_s2 + $0x118] sm:$0xff]  ;;  %v3283_v50 = vpack.c.bf16 %v356_v47, %v352_v45 }
  0x18   :  { %2182 = vmatpush1.bf16.msra.mxu0 %v2971_v21  ;;  %170 = vmatprep.mubr.f32.mxu0 %v2884_v3  ;;  %v387_v10 = vld [vmem:[%s3779_s2 + $0x1e8] sm:$0xff]  ;;  %v386_v16 = vld [vmem:[%s3779_s2 + $0x1e0] sm:$0xff]  ;;  %v365_v49 = vld [vmem:[%s3779_s2 + $0x138] sm:$0xff] }
  0x19   :  { %2001 = vmatmul.mubr.msk.f32.gmra.mrb[6].mxu1 %vm75_vm0, %v3071_v53  ;;  %2184 = vmatprep.subr.bf16.mxu0 %v2974_v22  ;;  %v3163_v13 = vpack.c.bf16 %v387_v10, %v383_v9  ;;  %v3188_v20 = vpack.c.bf16 %v386_v16, %v382_v14  ;;  %v3286_v51 = vpack.c.bf16 %v365_v49, %v361_v48  ;;  %v360_v52 = vld [vmem:[%s3779_s2 + $0x110] sm:$0xff]  ;;  %v369_v56 = vld [vmem:[%s3779_s2 + $0x158] sm:$0xff]  ;;  %v53_v31 = vld [vmem:[%s3781_s3] sm:$0xf] }
  0x1a   :  { %2130 = vmatpush1.bf16.msra.mxu1 %v3073_v54  ;;  %301 = vmatprep.mubr.f32.mxu1 %v2884_v3  ;;  %v373_v57 = vld [vmem:[%s3779_s2 + $0x178] sm:$0xff]  ;;  %v372_v63 = vld [vmem:[%s3779_s2 + $0x170] sm:$0xff] }
  0x1b   :  { %2132 = vmatprep.subr.bf16.mxu1 %v3076_v55  ;;  %1991 = vmatmul.mubr.msk.f32.gmra.mrb[2].mxu0 %vm75_vm0, %v2993_v27  ;;  %v341_v27 = vld [vmem:[%s3779_s2 + $0x78] sm:$0xff]  ;;  %v3308_v59 = vpack.c.bf16 %v373_v57, %v369_v56  ;;  %v376_v7 = vld [vmem:[%s3779_s2 + $0x190] sm:$0xff] }
  0x1c   :  { %2186 = vmatpush1.bf16.msra.mxu0 %v2997_v28  ;;  %176 = vmatprep.mubr.f32.mxu0 %v2884_v3  ;;  %v3216_v30 = vpack.c.bf16 %v341_v27, %v337_v26  ;;  %v377_v0 = vld [vmem:[%s3779_s2 + $0x198] sm:$0xff]  ;;  %v380_v8 = vld [vmem:[%s3779_s2 + $0x1b0] sm:$0xff] }
  0x1d   :  { %2002 = vmatmul.mubr.msk.f32.gmra.mrb[8].mxu1 %vm75_vm0, %v3098_v60  ;;  %2188 = vmatprep.subr.bf16.mxu0 %v3009_v32  ;;  %v381_v1 = vld [vmem:[%s3779_s2 + $0x1b8] sm:$0xff]  ;;  %v384_v16 = vld [vmem:[%s3779_s2 + $0x1d0] sm:$0xff] }
  0x1e   :  { %2134 = vmatpush1.bf16.msra.mxu1 %v3100_v61  ;;  %307 = vmatprep.mubr.f32.mxu1 %v2884_v3  ;;  %v385_v9 = vld [vmem:[%s3779_s2 + $0x1d8] sm:$0xff]  ;;  %v388_v17 = vld [vmem:[%s3779_s2 + $0x1f0] sm:$0xff] }
  0x1f   :  { %2136 = vmatprep.subr.bf16.mxu1 %v3103_v62  ;;  %1992 = vmatmul.mubr.msk.f32.gmra.mrb[4].mxu0 %vm75_vm0, %v3031_v40  ;;  %v353_v40 = vld [vmem:[%s3779_s2 + $0xd8] sm:$0xff]  ;;  %v3353_v18 = vpack.c.bf16 %v388_v17, %v384_v16 }
  0x20   :  { %2190 = vmatpush1.bf16.msra.mxu0 %v3038_v42  ;;  %182 = vmatprep.mubr.f32.mxu0 %v2884_v3  ;;  %v3264_v44 = vpack.c.bf16 %v357_v41, %v353_v40  ;;  %v389_v10 = vld [vmem:[%s3779_s2 + $0x1f8] sm:$0xff] }
  0x21   :  { %2003 = vmatmul.mubr.msk.f32.gmra.mrb[10].mxu1 %vm75_vm0, %v3129_v4  ;;  %2192 = vmatprep.subr.bf16.mxu0 %v3050_v46  ;;  %v3344_v14 = vpack.c.bf16 %v389_v10, %v385_v9 }
  0x22   :  { %2138 = vmatpush1.bf16.msra.mxu1 %v3131_v5  ;;  %313 = vmatprep.mubr.f32.mxu1 %v2884_v3 }
  0x23   :  { %2140 = vmatprep.subr.bf16.mxu1 %v3134_v6  ;;  %1993 = vmatmul.mubr.msk.f32.gmra.mrb[6].mxu0 %vm75_vm0, %v3071_v53  ;;  %v364_v53 = vld [vmem:[%s3779_s2 + $0x130] sm:$0xff] }
  0x24   :  { %2194 = vmatpush1.bf16.msra.mxu0 %v3073_v54  ;;  %188 = vmatprep.mubr.f32.mxu0 %v2884_v3  ;;  %v3305_v58 = vpack.c.bf16 %v364_v53, %v360_v52 }
  0x25   :  { %2004 = vmatmul.mubr.msk.f32.gmra.mrb[12].mxu1 %vm75_vm0, %v35_v11  ;;  %2196 = vmatprep.subr.bf16.mxu0 %v3076_v55 }
  0x26   :  { %2142 = vmatpush1.bf16.msra.mxu1 %v3160_v12  ;;  %319 = vmatprep.mubr.f32.mxu1 %v2884_v3 }
  0x27   :  { %2144 = vmatprep.subr.bf16.mxu1 %v3163_v13  ;;  %1994 = vmatmul.mubr.msk.f32.gmra.mrb[8].mxu0 %vm75_vm0, %v3098_v60  ;;  %v368_v60 = vld [vmem:[%s3779_s2 + $0x150] sm:$0xff] }
  0x28   :  { %2198 = vmatpush1.bf16.msra.mxu0 %v3100_v61  ;;  %194 = vmatprep.mubr.f32.mxu0 %v2884_v3  ;;  %v3323_v2 = vpack.c.bf16 %v372_v63, %v368_v60 }
  0x29   :  { %2005 = vmatmul.mubr.msk.f32.gmra.mrb[14].mxu1 %vm75_vm0, %v36_v19  ;;  %2200 = vmatprep.subr.bf16.mxu0 %v3103_v62 }
  0x2a   :  { %2146 = vmatpush1.bf16.msra.mxu1 %v3188_v20  ;;  %456 = vmatprep.mubr.f32.mxu1 %v2884_v3 }
  0x2b   :  { %2148 = vmatprep.subr.bf16.mxu1 %v3191_v23  ;;  %1995 = vmatmul.mubr.msk.f32.gmra.mrb[10].mxu0 %vm75_vm0, %v3129_v4  ;;  %v3326_v4 = vpack.c.bf16 %v381_v1, %v377_v0 }
  0x2c   :  { %2202 = vmatpush1.bf16.msra.mxu0 %v3131_v5  ;;  %200 = vmatprep.mubr.f32.mxu0 %v2884_v3 }
  0x2d   :  { %457 = vmatmul.mubr.f32.vlgmr.msra.gmra.mrb[16].mxu1 %v2884_v3  ;;  %2204 = vmatprep.subr.bf16.mxu0 %v3134_v6 }
  0x2e   :  { %2150 = vmatpush1.bf16.msra.mxu1 %v3213_v29  ;;  %527 = vmatprep.mubr.f32.mxu1 %v2884_v3 }
  0x2f   :  { %2152 = vmatprep.subr.bf16.mxu1 %v3216_v30  ;;  %1996 = vmatmul.mubr.msk.f32.gmra.mrb[12].mxu0 %vm75_vm0, %v35_v11  ;;  %v3341_v11 = vpack.c.bf16 %v380_v8, %v376_v7 }
  0x30   :  { %2206 = vmatpush1.bf16.msra.mxu0 %v3160_v12  ;;  %206 = vmatprep.mubr.f32.mxu0 %v2884_v3 }
  0x31   :  { %2208 = vmatprep.subr.bf16.mxu0 %v3163_v13 }
  0x32   :  { %2154 = vmatpush1.bf16.msra.mxu1 %v3237_v36 }
  0x33   :  { %2156 = vmatprep.subr.bf16.mxu1 %v3241_v37  ;;  %1997 = vmatmul.mubr.msk.f32.gmra.mrb[14].mxu0 %vm75_vm0, %v36_v19  ;;  %v55_v19 = vlaneseq }
  0x34   :  { %2210 = vmatpush1.bf16.msra.mxu0 %v3188_v20  ;;  %627 = vmatprep.mubr.f32.mxu0 %v2884_v3 }
  0x35   :  { %2244 = vmatprep.subr.bf16.mxu0 %v2952_v15  ;;  %v56_v26 = vshrl.u32 %v55_v19, 7 }
  0x36   :  { %2158 = vmatpush1.bf16.msra.mxu1 %v3261_v43 }
  0x37   :  { %2160 = vmatprep.subr.bf16.mxu1 %v3264_v44  ;;  %v57_v27 = vsub.s32 0, %v56_v26  ;;  %v61_v33 = vsub.s32 1, %v56_v26  ;;  %v65_v52 = vsub.s32 2, %v56_v26  ;;  %v69_v56 = vsub.s32 3, %v56_v26 }
  0x39   :  { %v3379_v34 = vrot.slane %v53_v31, %v57_v27  ;;  %v3381_v35 = vrot.slane %v53_v31, %v61_v33  ;;  %v3385_v63 = vrot.slane %v53_v31, %v65_v52  ;;  %v3387_v1 = vrot.slane %v53_v31, %v69_v56 }
  0x3a   :  { %2162 = vmatpush1.bf16.msra.mxu1 %v3283_v50 }
  0x3b   :  { %2164 = vmatprep.subr.bf16.mxu1 %v3286_v51 }
  0x3e   :  { %2166 = vmatpush1.bf16.msra.mxu1 %v3305_v58 }
  0x3f   :  { %2168 = vmatprep.subr.bf16.mxu1 %v3308_v59 }
  0x42   :  { %2170 = vmatpush1.bf16.msra.mxu1 %v3323_v2 }
  0x43   :  { %2172 = vmatprep.subr.bf16.mxu1 %v3326_v4 }
  0x46   :  { %2174 = vmatpush1.bf16.msra.mxu1 %v3341_v11 }
  0x47   :  { %2176 = vmatprep.subr.bf16.mxu1 %v3344_v14 }
  0x4a   :  { %2178 = vmatpush1.bf16.msra.mxu1 %v3353_v18 }
  0x4b   :  { %2212 = vmatprep.subr.bf16.mxu1 %v3191_v23 }
  0x4d   :  { %528 = vmatmul.mubr.f32.vlgmr.msra.gmra.mrb[0].mxu1 %v2884_v3 }
  0x4e   :  { %2214 = vmatpush1.bf16.msra.mxu1 %v3213_v29  ;;  %698 = vmatprep.mubr.f32.mxu1 %v2884_v3 }
  0x4f   :  { %2216 = vmatprep.subr.bf16.mxu1 %v3216_v30 }
  0x52   :  { %2218 = vmatpush1.bf16.msra.mxu1 %v3237_v36 }
  0x53   :  { %2220 = vmatprep.subr.bf16.mxu1 %v3241_v37 }
  0x56   :  { %2222 = vmatpush1.bf16.msra.mxu1 %v3261_v43 }
  0x57   :  { %2224 = vmatprep.subr.bf16.mxu1 %v3264_v44 }
  0x5a   :  { %2226 = vmatpush1.bf16.msra.mxu1 %v3283_v50 }
  0x5b   :  { %2228 = vmatprep.subr.bf16.mxu1 %v3286_v51 }
  0x5e   :  { %2230 = vmatpush1.bf16.msra.mxu1 %v3305_v58 }
  0x5f   :  { %2232 = vmatprep.subr.bf16.mxu1 %v3308_v59 }
  0x62   :  { %2234 = vmatpush1.bf16.msra.mxu1 %v3323_v2 }
  0x63   :  { %2236 = vmatprep.subr.bf16.mxu1 %v3326_v4 }
  0x66   :  { %2238 = vmatpush1.bf16.msra.mxu1 %v3341_v11 }
  0x67   :  { %2240 = vmatprep.subr.bf16.mxu1 %v3344_v14 }
  0x6a   :  { %2242 = vmatpush1.bf16.msra.mxu1 %v3353_v18 }
  0x6b   :  { %2276 = vmatprep.subr.bf16.mxu1 %v3191_v23 }
  0xea   :  { %v166_v24 = vpop.f32.mrb[0].mxu0 }
  0xeb   :  { %v168_v25 = vpop.f32.mrb[1].mxu0  ;;  %v167_v38 = vadd.f32 %v166_v24, %v3379_v34 }
  0xec   :  { %v169_v39 = vadd.f32 %v168_v25, %v3381_v35 }
 0x100   :  { %v458_v40 = vpop.f32.mrb[16].mxu1 }
 0x101   :  { %v534_v41 = vadd.f32 %v458_v40, %v167_v38  ;;  %v460_v45 = vpop.f32.mrb[17].mxu1 }
 0x102   :  { %v535_v47 = vadd.f32 %v460_v45, %v169_v39 }
 0x103   :  { %v2006_v49 = vmul.f32 -1.442695, %v534_v41 }
 0x104   :  { %v2007_v48 = vmul.f32 -1.442695, %v535_v47 }
 0x106   :  { %2724 = vpow2.f32 %v2007_v48 }
 0x107   :  { %2726 = vpow2.f32 %v2006_v49 }
 0x110   :  { %v2725_v53 = vpop.eup %2724 }
 0x111   :  { %v2727_v57 = vpop.eup %2726  ;;  %v547_v60 = vadd.f32 1.0, %v2725_v53 }
 0x112   :  { %v541_v0 = vadd.f32 1.0, %v2727_v57 }
 0x113   :  { %2728 = vrcp.f32 %v547_v60 }
 0x114   :  { %2730 = vrcp.f32 %v541_v0 }
 0x11d   :  { %v2729_v17 = vpop.eup %2728 }
 0x11e   :  { %v2731_v19 = vpop.eup %2730  ;;  %v557_v25 = vmul.f32 0.0, %v2729_v17 }
 0x120   :  { %v529_v7 = vpop.f32.mrb[0].mxu1 }
 0x121   :  { %v2677_v8 = vadd.f32 %v529_v7, %v3385_v63  ;;  %v531_v9 = vpop.f32.mrb[1].mxu1 }
 0x122   :  { %v2678_v10 = vadd.f32 %v531_v9, %v3387_v1 }
 0x123   :  { %2732 = vtanh.f32 %v2677_v8 }
 0x124   :  { %v2008_v16 = vmul.f32 -1.442695, %v2678_v10 }
 0x126   :  { %2734 = vpow2.f32 %v2008_v16 }
 0x12d   :  { %v2733_v24 = vpop.eup %2732 }
 0x12e   :  { %v558_v26 = vmul.f32 %v2733_v24, %v2731_v19 }
 0x130   :  { %v2735_v27 = vpop.eup %2734  ;;  %v3391_v33 = vadd.f32 %v558_v26, %v557_v25 }
 0x131   :  { %v554_v31 = vadd.f32 1.0, %v2735_v27 }
 0x132   :  { %2736 = vtanh.f32 %v3391_v33 }
 0x133   :  { %2738 = vrcp.f32 %v554_v31 }
 0x13c   :  { %v2737_v38 = vpop.eup %2736 }
 0x13d   :  { %v2739_v39 = vpop.eup %2738 }
 0x13e   :  { %v3394_v40 = vmul.f32 %v2739_v39, %v2737_v38 }
 0x140   :  { %628 = vmatmul.mubr.f32.vlgmr.msra.gmra.mrb[2].mxu0 %v3394_v40  ;;  %699 = vmatmul.mubr.f32.vlgmr.msra.gmra.mrb[2].mxu1 %v3394_v40 }
 0x141   :  { %2246 = vmatpush1.bf16.msra.mxu0 %v2971_v21  ;;  %2278 = vmatpush1.bf16.msra.mxu1 %v3213_v29 }
 0x142   :  { %2248 = vmatprep.subr.bf16.mxu0 %v2974_v22  ;;  %2280 = vmatprep.subr.bf16.mxu1 %v3216_v30 }
 0x143   :  { %798 = vmatprep.mubr.f32.mxu0 %v2884_v3  ;;  %869 = vmatprep.mubr.f32.mxu1 %v2884_v3 }
 0x145   :  { %2250 = vmatpush1.bf16.msra.mxu0 %v2997_v28  ;;  %2282 = vmatpush1.bf16.msra.mxu1 %v3237_v36 }
 0x146   :  { %2252 = vmatprep.subr.bf16.mxu0 %v3009_v32  ;;  %2284 = vmatprep.subr.bf16.mxu1 %v3241_v37 }
 0x149   :  { %2254 = vmatpush1.bf16.msra.mxu0 %v3038_v42  ;;  %2286 = vmatpush1.bf16.msra.mxu1 %v3261_v43 }
 0x14a   :  { %2256 = vmatprep.subr.bf16.mxu0 %v3050_v46  ;;  %2288 = vmatprep.subr.bf16.mxu1 %v3264_v44 }
 0x14d   :  { %2258 = vmatpush1.bf16.msra.mxu0 %v3073_v54  ;;  %2290 = vmatpush1.bf16.msra.mxu1 %v3283_v50 }
 0x14e   :  { %2260 = vmatprep.subr.bf16.mxu0 %v3076_v55  ;;  %2292 = vmatprep.subr.bf16.mxu1 %v3286_v51 }
 0x151   :  { %2262 = vmatpush1.bf16.msra.mxu0 %v3100_v61  ;;  %2294 = vmatpush1.bf16.msra.mxu1 %v3305_v58 }
 0x152   :  { %2264 = vmatprep.subr.bf16.mxu0 %v3103_v62  ;;  %2296 = vmatprep.subr.bf16.mxu1 %v3308_v59 }
 0x155   :  { %2266 = vmatpush1.bf16.msra.mxu0 %v3131_v5  ;;  %2298 = vmatpush1.bf16.msra.mxu1 %v3323_v2 }
 0x156   :  { %2268 = vmatprep.subr.bf16.mxu0 %v3134_v6  ;;  %2300 = vmatprep.subr.bf16.mxu1 %v3326_v4 }
 0x159   :  { %2270 = vmatpush1.bf16.msra.mxu0 %v3160_v12  ;;  %2302 = vmatpush1.bf16.msra.mxu1 %v3341_v11 }
 0x15a   :  { %2272 = vmatprep.subr.bf16.mxu0 %v3163_v13  ;;  %2304 = vmatprep.subr.bf16.mxu1 %v3344_v14 }
 0x15d   :  { %2274 = vmatpush1.bf16.msra.mxu0 %v3188_v20  ;;  %2306 = vmatpush1.bf16.msra.mxu1 %v3353_v18 }
 0x15e   :  { %2308 = vmatprep.subr.bf16.mxu0 %v2952_v15  ;;  %2340 = vmatprep.subr.bf16.mxu1 %v3191_v23 }
 0x213   :  { %v629_v41 = vpop.f32.mrb[2].mxu0  ;;  %v700_v45 = vpop.f32.mrb[2].mxu1 }
 0x214   :  { %v2663_v47 = vadd.f32 %v629_v41, %v3379_v34  ;;  %v631_v48 = vpop.f32.mrb[3].mxu0  ;;  %v702_v49 = vpop.f32.mrb[3].mxu1  ;;  %v2679_v0 = vadd.f32 %v700_v45, %v3385_v63 }
 0x215   :  { %v2664_v52 = vadd.f32 %v631_v48, %v3381_v35  ;;  %v2680_v57 = vadd.f32 %v702_v49, %v3387_v1 }
 0x216   :  { %v2009_v53 = vmul.f32 -1.442695, %v2663_v47 }
 0x217   :  { %v2010_v56 = vmul.f32 -1.442695, %v2664_v52  ;;  %v2011_v60 = vmul.f32 -1.442695, %v2680_v57 }
 0x218   :  { %2740 = vpow2.f32 %v2009_v53 }
 0x219   :  { %2742 = vpow2.f32 %v2010_v56 }
 0x21a   :  { %2744 = vpow2.f32 %v2011_v60 }
 0x21b   :  { %2746 = vtanh.f32 %v2679_v0 }
 0x222   :  { %v2741_v7 = vpop.eup %2740 }
 0x223   :  { %v2743_v8 = vpop.eup %2742  ;;  %v712_v9 = vadd.f32 1.0, %v2741_v7 }
 0x224   :  { %v718_v10 = vadd.f32 1.0, %v2743_v8  ;;  %v2745_v16 = vpop.eup %2744 }
 0x225   :  { %2748 = vrcp.f32 %v712_v9  ;;  %v2747_v17 = vpop.eup %2746  ;;  %v725_v26 = vadd.f32 1.0, %v2745_v16 }
 0x226   :  { %2750 = vrcp.f32 %v718_v10 }
 0x227   :  { %2752 = vrcp.f32 %v725_v26 }
 0x22f   :  { %v2749_v19 = vpop.eup %2748 }
 0x230   :  { %v2751_v24 = vpop.eup %2750  ;;  %v729_v25 = vmul.f32 %v2749_v19, %v2747_v17 }
 0x231   :  { %v728_v27 = vmul.f32 %v2751_v24, %v3391_v33  ;;  %v2753_v38 = vpop.eup %2752 }
 0x233   :  { %v3437_v31 = vadd.f32 %v729_v25, %v728_v27 }
 0x235   :  { %2754 = vtanh.f32 %v3437_v31 }
 0x23f   :  { %v2755_v39 = vpop.eup %2754 }
 0x240   :  { %v3440_v41 = vmul.f32 %v2755_v39, %v2753_v38 }
 0x242   :  { %799 = vmatmul.mubr.f32.vlgmr.msra.gmra.mrb[4].mxu0 %v3440_v41  ;;  %870 = vmatmul.mubr.f32.vlgmr.msra.gmra.mrb[4].mxu1 %v3440_v41 }
 0x243   :  { %2310 = vmatpush1.bf16.msra.mxu0 %v2971_v21  ;;  %2342 = vmatpush1.bf16.msra.mxu1 %v3213_v29 }
 0x244   :  { %2312 = vmatprep.subr.bf16.mxu0 %v2974_v22  ;;  %2344 = vmatprep.subr.bf16.mxu1 %v3216_v30 }
 0x245   :  { %969 = vmatprep.mubr.f32.mxu0 %v2884_v3  ;;  %1040 = vmatprep.mubr.f32.mxu1 %v2884_v3 }
 0x247   :  { %2314 = vmatpush1.bf16.msra.mxu0 %v2997_v28  ;;  %2346 = vmatpush1.bf16.msra.mxu1 %v3237_v36 }
 0x248   :  { %2316 = vmatprep.subr.bf16.mxu0 %v3009_v32  ;;  %2348 = vmatprep.subr.bf16.mxu1 %v3241_v37 }
 0x24b   :  { %2318 = vmatpush1.bf16.msra.mxu0 %v3038_v42  ;;  %2350 = vmatpush1.bf16.msra.mxu1 %v3261_v43 }
 0x24c   :  { %2320 = vmatprep.subr.bf16.mxu0 %v3050_v46  ;;  %2352 = vmatprep.subr.bf16.mxu1 %v3264_v44 }
 0x24f   :  { %2322 = vmatpush1.bf16.msra.mxu0 %v3073_v54  ;;  %2354 = vmatpush1.bf16.msra.mxu1 %v3283_v50 }
 0x250   :  { %2324 = vmatprep.subr.bf16.mxu0 %v3076_v55  ;;  %2356 = vmatprep.subr.bf16.mxu1 %v3286_v51 }
 0x253   :  { %2326 = vmatpush1.bf16.msra.mxu0 %v3100_v61  ;;  %2358 = vmatpush1.bf16.msra.mxu1 %v3305_v58 }
 0x254   :  { %2328 = vmatprep.subr.bf16.mxu0 %v3103_v62  ;;  %2360 = vmatprep.subr.bf16.mxu1 %v3308_v59 }
 0x257   :  { %2330 = vmatpush1.bf16.msra.mxu0 %v3131_v5  ;;  %2362 = vmatpush1.bf16.msra.mxu1 %v3323_v2 }
 0x258   :  { %2332 = vmatprep.subr.bf16.mxu0 %v3134_v6  ;;  %2364 = vmatprep.subr.bf16.mxu1 %v3326_v4 }
 0x25b   :  { %2334 = vmatpush1.bf16.msra.mxu0 %v3160_v12  ;;  %2366 = vmatpush1.bf16.msra.mxu1 %v3341_v11 }
 0x25c   :  { %2336 = vmatprep.subr.bf16.mxu0 %v3163_v13  ;;  %2368 = vmatprep.subr.bf16.mxu1 %v3344_v14 }
 0x25f   :  { %2338 = vmatpush1.bf16.msra.mxu0 %v3188_v20  ;;  %2370 = vmatpush1.bf16.msra.mxu1 %v3353_v18 }
 0x260   :  { %2372 = vmatprep.subr.bf16.mxu0 %v2952_v15  ;;  %2404 = vmatprep.subr.bf16.mxu1 %v3191_v23 }
 0x315   :  { %v800_v33 = vpop.f32.mrb[4].mxu0  ;;  %v871_v45 = vpop.f32.mrb[4].mxu1 }
 0x316   :  { %v2665_v47 = vadd.f32 %v800_v33, %v3379_v34  ;;  %v802_v48 = vpop.f32.mrb[5].mxu0  ;;  %v873_v49 = vpop.f32.mrb[5].mxu1  ;;  %v2681_v0 = vadd.f32 %v871_v45, %v3385_v63 }
 0x317   :  { %v2666_v52 = vadd.f32 %v802_v48, %v3381_v35  ;;  %v2682_v57 = vadd.f32 %v873_v49, %v3387_v1 }
 0x318   :  { %v2012_v53 = vmul.f32 -1.442695, %v2665_v47 }
 0x319   :  { %v2013_v56 = vmul.f32 -1.442695, %v2666_v52  ;;  %v2014_v60 = vmul.f32 -1.442695, %v2682_v57 }
 0x31a   :  { %2756 = vpow2.f32 %v2012_v53 }
 0x31b   :  { %2758 = vpow2.f32 %v2013_v56 }
 0x31c   :  { %2760 = vpow2.f32 %v2014_v60 }
 0x31d   :  { %2762 = vtanh.f32 %v2681_v0 }
 0x324   :  { %v2757_v7 = vpop.eup %2756 }
 0x325   :  { %v2759_v8 = vpop.eup %2758  ;;  %v883_v9 = vadd.f32 1.0, %v2757_v7 }
 0x326   :  { %v889_v10 = vadd.f32 1.0, %v2759_v8  ;;  %v2761_v16 = vpop.eup %2760 }
 0x327   :  { %2764 = vrcp.f32 %v883_v9  ;;  %v2763_v17 = vpop.eup %2762  ;;  %v896_v26 = vadd.f32 1.0, %v2761_v16 }
 0x328   :  { %2766 = vrcp.f32 %v889_v10 }
 0x329   :  { %2768 = vrcp.f32 %v896_v26 }
 0x331   :  { %v2765_v19 = vpop.eup %2764 }
 0x332   :  { %v2767_v24 = vpop.eup %2766  ;;  %v900_v25 = vmul.f32 %v2765_v19, %v2763_v17 }
 0x333   :  { %v899_v27 = vmul.f32 %v2767_v24, %v3437_v31  ;;  %v2769_v39 = vpop.eup %2768 }
 0x335   :  { %v3483_v38 = vadd.f32 %v900_v25, %v899_v27 }
 0x337   :  { %2770 = vtanh.f32 %v3483_v38 }
 0x341   :  { %v2771_v33 = vpop.eup %2770 }
 0x342   :  { %v3486_v45 = vmul.f32 %v2771_v33, %v2769_v39 }
 0x344   :  { %970 = vmatmul.mubr.f32.vlgmr.msra.gmra.mrb[6].mxu0 %v3486_v45  ;;  %1041 = vmatmul.mubr.f32.vlgmr.msra.gmra.mrb[6].mxu1 %v3486_v45 }
 0x345   :  { %2374 = vmatpush1.bf16.msra.mxu0 %v2971_v21  ;;  %2406 = vmatpush1.bf16.msra.mxu1 %v3213_v29 }
 0x346   :  { %2376 = vmatprep.subr.bf16.mxu0 %v2974_v22  ;;  %2408 = vmatprep.subr.bf16.mxu1 %v3216_v30 }
 0x347   :  { %1140 = vmatprep.mubr.f32.mxu0 %v2884_v3  ;;  %1211 = vmatprep.mubr.f32.mxu1 %v2884_v3 }
 0x349   :  { %2378 = vmatpush1.bf16.msra.mxu0 %v2997_v28  ;;  %2410 = vmatpush1.bf16.msra.mxu1 %v3237_v36 }
 0x34a   :  { %2380 = vmatprep.subr.bf16.mxu0 %v3009_v32  ;;  %2412 = vmatprep.subr.bf16.mxu1 %v3241_v37 }
 0x34d   :  { %2382 = vmatpush1.bf16.msra.mxu0 %v3038_v42  ;;  %2414 = vmatpush1.bf16.msra.mxu1 %v3261_v43 }
 0x34e   :  { %2384 = vmatprep.subr.bf16.mxu0 %v3050_v46  ;;  %2416 = vmatprep.subr.bf16.mxu1 %v3264_v44 }
 0x351   :  { %2386 = vmatpush1.bf16.msra.mxu0 %v3073_v54  ;;  %2418 = vmatpush1.bf16.msra.mxu1 %v3283_v50 }
 0x352   :  { %2388 = vmatprep.subr.bf16.mxu0 %v3076_v55  ;;  %2420 = vmatprep.subr.bf16.mxu1 %v3286_v51 }
 0x355   :  { %2390 = vmatpush1.bf16.msra.mxu0 %v3100_v61  ;;  %2422 = vmatpush1.bf16.msra.mxu1 %v3305_v58 }
 0x356   :  { %2392 = vmatprep.subr.bf16.mxu0 %v3103_v62  ;;  %2424 = vmatprep.subr.bf16.mxu1 %v3308_v59 }
 0x359   :  { %2394 = vmatpush1.bf16.msra.mxu0 %v3131_v5  ;;  %2426 = vmatpush1.bf16.msra.mxu1 %v3323_v2 }
 0x35a   :  { %2396 = vmatprep.subr.bf16.mxu0 %v3134_v6  ;;  %2428 = vmatprep.subr.bf16.mxu1 %v3326_v4 }
 0x35d   :  { %2398 = vmatpush1.bf16.msra.mxu0 %v3160_v12  ;;  %2430 = vmatpush1.bf16.msra.mxu1 %v3341_v11 }
 0x35e   :  { %2400 = vmatprep.subr.bf16.mxu0 %v3163_v13  ;;  %2432 = vmatprep.subr.bf16.mxu1 %v3344_v14 }
 0x361   :  { %2402 = vmatpush1.bf16.msra.mxu0 %v3188_v20  ;;  %2434 = vmatpush1.bf16.msra.mxu1 %v3353_v18 }
 0x362   :  { %2436 = vmatprep.subr.bf16.mxu0 %v2952_v15  ;;  %2468 = vmatprep.subr.bf16.mxu1 %v3191_v23 }
 0x417   :  { %v971_v31 = vpop.f32.mrb[6].mxu0  ;;  %v1042_v47 = vpop.f32.mrb[6].mxu1 }
 0x418   :  { %v2667_v48 = vadd.f32 %v971_v31, %v3379_v34  ;;  %v973_v49 = vpop.f32.mrb[7].mxu0  ;;  %v1044_v52 = vpop.f32.mrb[7].mxu1  ;;  %v2683_v7 = vadd.f32 %v1042_v47, %v3385_v63 }
 0x419   :  { %v2668_v53 = vadd.f32 %v973_v49, %v3381_v35  ;;  %v2684_v60 = vadd.f32 %v1044_v52, %v3387_v1 }
 0x41a   :  { %v2015_v56 = vmul.f32 -1.442695, %v2667_v48 }
 0x41b   :  { %v2016_v57 = vmul.f32 -1.442695, %v2668_v53  ;;  %v2017_v0 = vmul.f32 -1.442695, %v2684_v60 }
 0x41c   :  { %2772 = vpow2.f32 %v2015_v56 }
 0x41d   :  { %2774 = vpow2.f32 %v2016_v57 }
 0x41e   :  { %2776 = vpow2.f32 %v2017_v0 }
 0x41f   :  { %2778 = vtanh.f32 %v2683_v7 }
 0x426   :  { %v2773_v8 = vpop.eup %2772 }
 0x427   :  { %v2775_v9 = vpop.eup %2774  ;;  %v1054_v10 = vadd.f32 1.0, %v2773_v8 }
 0x428   :  { %v1060_v16 = vadd.f32 1.0, %v2775_v9  ;;  %v2777_v17 = vpop.eup %2776 }
 0x429   :  { %2780 = vrcp.f32 %v1054_v10  ;;  %v2779_v19 = vpop.eup %2778  ;;  %v1067_v27 = vadd.f32 1.0, %v2777_v17 }
 0x42a   :  { %2782 = vrcp.f32 %v1060_v16 }
 0x42b   :  { %2784 = vrcp.f32 %v1067_v27 }
 0x433   :  { %v2781_v24 = vpop.eup %2780 }
 0x434   :  { %v2783_v25 = vpop.eup %2782  ;;  %v1071_v26 = vmul.f32 %v2781_v24, %v2779_v19 }
 0x435   :  { %v1070_v39 = vmul.f32 %v2783_v25, %v3483_v38  ;;  %v2785_v31 = vpop.eup %2784 }
 0x437   :  { %v3529_v33 = vadd.f32 %v1071_v26, %v1070_v39 }
 0x439   :  { %2786 = vtanh.f32 %v3529_v33 }
 0x443   :  { %v2787_v47 = vpop.eup %2786 }
 0x444   :  { %v3532_v48 = vmul.f32 %v2787_v47, %v2785_v31 }
 0x446   :  { %1141 = vmatmul.mubr.f32.vlgmr.msra.gmra.mrb[8].mxu0 %v3532_v48  ;;  %1212 = vmatmul.mubr.f32.vlgmr.msra.gmra.mrb[8].mxu1 %v3532_v48 }
 0x447   :  { %2438 = vmatpush1.bf16.msra.mxu0 %v2971_v21  ;;  %2470 = vmatpush1.bf16.msra.mxu1 %v3213_v29 }
 0x448   :  { %2440 = vmatprep.subr.bf16.mxu0 %v2974_v22  ;;  %2472 = vmatprep.subr.bf16.mxu1 %v3216_v30 }
 0x449   :  { %1311 = vmatprep.mubr.f32.mxu0 %v2884_v3  ;;  %1382 = vmatprep.mubr.f32.mxu1 %v2884_v3 }
 0x44b   :  { %2442 = vmatpush1.bf16.msra.mxu0 %v2997_v28  ;;  %2474 = vmatpush1.bf16.msra.mxu1 %v3237_v36 }
 0x44c   :  { %2444 = vmatprep.subr.bf16.mxu0 %v3009_v32  ;;  %2476 = vmatprep.subr.bf16.mxu1 %v3241_v37 }
 0x44f   :  { %2446 = vmatpush1.bf16.msra.mxu0 %v3038_v42  ;;  %2478 = vmatpush1.bf16.msra.mxu1 %v3261_v43 }
 0x450   :  { %2448 = vmatprep.subr.bf16.mxu0 %v3050_v46  ;;  %2480 = vmatprep.subr.bf16.mxu1 %v3264_v44 }
 0x453   :  { %2450 = vmatpush1.bf16.msra.mxu0 %v3073_v54  ;;  %2482 = vmatpush1.bf16.msra.mxu1 %v3283_v50 }
 0x454   :  { %2452 = vmatprep.subr.bf16.mxu0 %v3076_v55  ;;  %2484 = vmatprep.subr.bf16.mxu1 %v3286_v51 }
 0x457   :  { %2454 = vmatpush1.bf16.msra.mxu0 %v3100_v61  ;;  %2486 = vmatpush1.bf16.msra.mxu1 %v3305_v58 }
 0x458   :  { %2456 = vmatprep.subr.bf16.mxu0 %v3103_v62  ;;  %2488 = vmatprep.subr.bf16.mxu1 %v3308_v59 }
 0x45b   :  { %2458 = vmatpush1.bf16.msra.mxu0 %v3131_v5  ;;  %2490 = vmatpush1.bf16.msra.mxu1 %v3323_v2 }
 0x45c   :  { %2460 = vmatprep.subr.bf16.mxu0 %v3134_v6  ;;  %2492 = vmatprep.subr.bf16.mxu1 %v3326_v4 }
 0x45f   :  { %2462 = vmatpush1.bf16.msra.mxu0 %v3160_v12  ;;  %2494 = vmatpush1.bf16.msra.mxu1 %v3341_v11 }
 0x460   :  { %2464 = vmatprep.subr.bf16.mxu0 %v3163_v13  ;;  %2496 = vmatprep.subr.bf16.mxu1 %v3344_v14 }
 0x463   :  { %2466 = vmatpush1.bf16.msra.mxu0 %v3188_v20  ;;  %2498 = vmatpush1.bf16.msra.mxu1 %v3353_v18 }
 0x464   :  { %2500 = vmatprep.subr.bf16.mxu0 %v2952_v15  ;;  %2532 = vmatprep.subr.bf16.mxu1 %v3191_v23 }
 0x519   :  { %v1142_v38 = vpop.f32.mrb[8].mxu0  ;;  %v1213_v49 = vpop.f32.mrb[8].mxu1 }
 0x51a   :  { %v2669_v52 = vadd.f32 %v1142_v38, %v3379_v34  ;;  %v1144_v53 = vpop.f32.mrb[9].mxu0  ;;  %v1215_v56 = vpop.f32.mrb[9].mxu1  ;;  %v2685_v9 = vadd.f32 %v1213_v49, %v3385_v63 }
 0x51b   :  { %v2670_v57 = vadd.f32 %v1144_v53, %v3381_v35  ;;  %v2686_v7 = vadd.f32 %v1215_v56, %v3387_v1 }
 0x51c   :  { %v2018_v60 = vmul.f32 -1.442695, %v2669_v52 }
 0x51d   :  { %v2019_v0 = vmul.f32 -1.442695, %v2670_v57  ;;  %v2020_v8 = vmul.f32 -1.442695, %v2686_v7 }
 0x51e   :  { %2788 = vpow2.f32 %v2018_v60 }
 0x51f   :  { %2790 = vpow2.f32 %v2019_v0 }
 0x520   :  { %2792 = vpow2.f32 %v2020_v8 }
 0x521   :  { %2794 = vtanh.f32 %v2685_v9 }
 0x528   :  { %v2789_v10 = vpop.eup %2788 }
 0x529   :  { %v2791_v16 = vpop.eup %2790  ;;  %v1225_v17 = vadd.f32 1.0, %v2789_v10 }
 0x52a   :  { %v1231_v19 = vadd.f32 1.0, %v2791_v16  ;;  %v2793_v24 = vpop.eup %2792 }
 0x52b   :  { %2796 = vrcp.f32 %v1225_v17  ;;  %v2795_v25 = vpop.eup %2794  ;;  %v1238_v31 = vadd.f32 1.0, %v2793_v24 }
 0x52c   :  { %2798 = vrcp.f32 %v1231_v19 }
 0x52d   :  { %2800 = vrcp.f32 %v1238_v31 }
 0x535   :  { %v2797_v26 = vpop.eup %2796 }
 0x536   :  { %v2799_v27 = vpop.eup %2798  ;;  %v1242_v39 = vmul.f32 %v2797_v26, %v2795_v25 }
 0x537   :  { %v1241_v47 = vmul.f32 %v2799_v27, %v3529_v33  ;;  %v2801_v49 = vpop.eup %2800 }
 0x539   :  { %v3575_v38 = vadd.f32 %v1242_v39, %v1241_v47 }
 0x53b   :  { %2802 = vtanh.f32 %v3575_v38 }
 0x545   :  { %v2803_v52 = vpop.eup %2802 }
 0x546   :  { %v3578_v53 = vmul.f32 %v2803_v52, %v2801_v49 }
 0x548   :  { %1312 = vmatmul.mubr.f32.vlgmr.msra.gmra.mrb[10].mxu0 %v3578_v53  ;;  %1383 = vmatmul.mubr.f32.vlgmr.msra.gmra.mrb[10].mxu1 %v3578_v53 }
 0x549   :  { %2502 = vmatpush1.bf16.msra.mxu0 %v2971_v21  ;;  %2534 = vmatpush1.bf16.msra.mxu1 %v3213_v29 }
 0x54a   :  { %2504 = vmatprep.subr.bf16.mxu0 %v2974_v22  ;;  %2536 = vmatprep.subr.bf16.mxu1 %v3216_v30 }
 0x54b   :  { %1482 = vmatprep.mubr.f32.mxu0 %v2884_v3  ;;  %1553 = vmatprep.mubr.f32.mxu1 %v2884_v3 }
 0x54d   :  { %2506 = vmatpush1.bf16.msra.mxu0 %v2997_v28  ;;  %2538 = vmatpush1.bf16.msra.mxu1 %v3237_v36 }
 0x54e   :  { %2508 = vmatprep.subr.bf16.mxu0 %v3009_v32  ;;  %2540 = vmatprep.subr.bf16.mxu1 %v3241_v37 }
 0x551   :  { %2510 = vmatpush1.bf16.msra.mxu0 %v3038_v42  ;;  %2542 = vmatpush1.bf16.msra.mxu1 %v3261_v43 }
 0x552   :  { %2512 = vmatprep.subr.bf16.mxu0 %v3050_v46  ;;  %2544 = vmatprep.subr.bf16.mxu1 %v3264_v44 }
 0x555   :  { %2514 = vmatpush1.bf16.msra.mxu0 %v3073_v54  ;;  %2546 = vmatpush1.bf16.msra.mxu1 %v3283_v50 }
 0x556   :  { %2516 = vmatprep.subr.bf16.mxu0 %v3076_v55  ;;  %2548 = vmatprep.subr.bf16.mxu1 %v3286_v51 }
 0x559   :  { %2518 = vmatpush1.bf16.msra.mxu0 %v3100_v61  ;;  %2550 = vmatpush1.bf16.msra.mxu1 %v3305_v58 }
 0x55a   :  { %2520 = vmatprep.subr.bf16.mxu0 %v3103_v62  ;;  %2552 = vmatprep.subr.bf16.mxu1 %v3308_v59 }
 0x55d   :  { %2522 = vmatpush1.bf16.msra.mxu0 %v3131_v5  ;;  %2554 = vmatpush1.bf16.msra.mxu1 %v3323_v2 }
 0x55e   :  { %2524 = vmatprep.subr.bf16.mxu0 %v3134_v6  ;;  %2556 = vmatprep.subr.bf16.mxu1 %v3326_v4 }
 0x561   :  { %2526 = vmatpush1.bf16.msra.mxu0 %v3160_v12  ;;  %2558 = vmatpush1.bf16.msra.mxu1 %v3341_v11 }
 0x562   :  { %2528 = vmatprep.subr.bf16.mxu0 %v3163_v13  ;;  %2560 = vmatprep.subr.bf16.mxu1 %v3344_v14 }
 0x565   :  { %2530 = vmatpush1.bf16.msra.mxu0 %v3188_v20  ;;  %2562 = vmatpush1.bf16.msra.mxu1 %v3353_v18 }
 0x566   :  { %2564 = vmatprep.subr.bf16.mxu0 %v2952_v15  ;;  %2596 = vmatprep.subr.bf16.mxu1 %v3191_v23 }
 0x61b   :  { %v1313_v33 = vpop.f32.mrb[10].mxu0  ;;  %v1384_v56 = vpop.f32.mrb[10].mxu1 }
 0x61c   :  { %v2671_v57 = vadd.f32 %v1313_v33, %v3379_v34  ;;  %v1315_v60 = vpop.f32.mrb[11].mxu0  ;;  %v1386_v0 = vpop.f32.mrb[11].mxu1  ;;  %v2687_v17 = vadd.f32 %v1384_v56, %v3385_v63 }
 0x61d   :  { %v2672_v7 = vadd.f32 %v1315_v60, %v3381_v35  ;;  %v2688_v10 = vadd.f32 %v1386_v0, %v3387_v1  ;;  %v1774_v60 = vld [vmem:[%s3782_s4 + $0x20] sm:$0xff]  ;;  %v1775_v0 = vld [vmem:[%s3782_s4 + $0x28] sm:$0xff] }
 0x61e   :  { %v2021_v8 = vmul.f32 -1.442695, %v2671_v57 }
 0x61f   :  { %v2022_v9 = vmul.f32 -1.442695, %v2672_v7  ;;  %v2023_v16 = vmul.f32 -1.442695, %v2688_v10  ;;  %v2635_v7 = vpack.c.bf16 %v1775_v0, %v1774_v60 }
 0x620   :  { %2804 = vpow2.f32 %v2021_v8  ;;  %v1776_v8 = vld [vmem:[%s3782_s4 + $0x30] sm:$0xff] }
 0x621   :  { %2806 = vpow2.f32 %v2022_v9  ;;  %v1777_v9 = vld [vmem:[%s3782_s4 + $0x38] sm:$0xff] }
 0x622   :  { %2808 = vpow2.f32 %v2023_v16  ;;  %v2639_v10 = vpack.c.bf16 %v1777_v9, %v1776_v8  ;;  %v1778_v16 = vld [vmem:[%s3782_s4 + $0x40] sm:$0xff] }
 0x623   :  { %2810 = vtanh.f32 %v2687_v17 }
 0x62a   :  { %v2805_v15 = vpop.eup %2804 }
 0x62b   :  { %v2807_v19 = vpop.eup %2806  ;;  %v1396_v23 = vadd.f32 1.0, %v2805_v15  ;;  %v1780_v15 = vld [vmem:[%s3782_s4 + $0x50] sm:$0xff] }
 0x62c   :  { %v1402_v24 = vadd.f32 1.0, %v2807_v19  ;;  %v2809_v25 = vpop.eup %2808  ;;  %v1781_v19 = vld [vmem:[%s3782_s4 + $0x58] sm:$0xff] }
 0x62d   :  { %2812 = vrcp.f32 %v1396_v23  ;;  %v2811_v26 = vpop.eup %2810  ;;  %v1409_v47 = vadd.f32 1.0, %v2809_v25  ;;  %v2647_v23 = vpack.c.bf16 %v1781_v19, %v1780_v15  ;;  %v1783_v25 = vld [vmem:[%s3782_s4 + $0x68] sm:$0xff] }
 0x62e   :  { %2814 = vrcp.f32 %v1402_v24  ;;  %v1782_v24 = vld [vmem:[%s3782_s4 + $0x60] sm:$0xff] }
 0x62f   :  { %2816 = vrcp.f32 %v1409_v47 }
 0x637   :  { %v2813_v27 = vpop.eup %2812 }
 0x638   :  { %v2815_v39 = vpop.eup %2814  ;;  %v1413_v31 = vmul.f32 %v2813_v27, %v2811_v26  ;;  %v2651_v26 = vpack.c.bf16 %v1783_v25, %v1782_v24  ;;  %v1784_v27 = vld [vmem:[%s3782_s4 + $0x70] sm:$0xff] }
 0x639   :  { %v1412_v49 = vmul.f32 %v2815_v39, %v3575_v38  ;;  %v2817_v33 = vpop.eup %2816  ;;  %v1785_v39 = vld [vmem:[%s3782_s4 + $0x78] sm:$0xff] }
 0x63b   :  { %v3621_v52 = vadd.f32 %v1413_v31, %v1412_v49  ;;  %v2655_v31 = vpack.c.bf16 %v1785_v39, %v1784_v27 }
 0x63d   :  { %2818 = vtanh.f32 %v3621_v52 }
 0x647   :  { %v2819_v56 = vpop.eup %2818 }
 0x648   :  { %v3624_v57 = vmul.f32 %v2819_v56, %v2817_v33 }
 0x64a   :  { %1483 = vmatmul.mubr.f32.vlgmr.msra.gmra.mrb[12].mxu0 %v3624_v57  ;;  %1554 = vmatmul.mubr.f32.vlgmr.msra.gmra.mrb[12].mxu1 %v3624_v57 }
 0x64b   :  { %2566 = vmatpush1.bf16.msra.mxu0 %v2971_v21  ;;  %2598 = vmatpush1.bf16.msra.mxu1 %v3213_v29  ;;  %v1771_v21 = vld [vmem:[%s3782_s4 + $0x8] sm:$0xff] }
 0x64c   :  { %2568 = vmatprep.subr.bf16.mxu0 %v2974_v22  ;;  %2600 = vmatprep.subr.bf16.mxu1 %v3216_v30 }
 0x64d   :  { %1653 = vmatprep.mubr.f32.mxu0 %v2884_v3  ;;  %1724 = vmatprep.mubr.f32.mxu1 %v2884_v3  ;;  %v1770_v3 = vld [vmem:[%s3782_s4] sm:$0xff] }
 0x64e   :  { %v2627_v22 = vpack.c.bf16 %v1771_v21, %v1770_v3 }
 0x64f   :  { %2570 = vmatpush1.bf16.msra.mxu0 %v2997_v28  ;;  %2602 = vmatpush1.bf16.msra.mxu1 %v3237_v36 }
 0x650   :  { %2572 = vmatprep.subr.bf16.mxu0 %v3009_v32  ;;  %2604 = vmatprep.subr.bf16.mxu1 %v3241_v37 }
 0x653   :  { %2574 = vmatpush1.bf16.msra.mxu0 %v3038_v42  ;;  %2606 = vmatpush1.bf16.msra.mxu1 %v3261_v43 }
 0x654   :  { %2576 = vmatprep.subr.bf16.mxu0 %v3050_v46  ;;  %2608 = vmatprep.subr.bf16.mxu1 %v3264_v44 }
 0x657   :  { %2578 = vmatpush1.bf16.msra.mxu0 %v3073_v54  ;;  %2610 = vmatpush1.bf16.msra.mxu1 %v3283_v50 }
 0x658   :  { %2580 = vmatprep.subr.bf16.mxu0 %v3076_v55  ;;  %2612 = vmatprep.subr.bf16.mxu1 %v3286_v51 }
 0x65b   :  { %2582 = vmatpush1.bf16.msra.mxu0 %v3100_v61  ;;  %2614 = vmatpush1.bf16.msra.mxu1 %v3305_v58 }
 0x65c   :  { %2584 = vmatprep.subr.bf16.mxu0 %v3103_v62  ;;  %2616 = vmatprep.subr.bf16.mxu1 %v3308_v59 }
 0x65f   :  { %2586 = vmatpush1.bf16.msra.mxu0 %v3131_v5  ;;  %2618 = vmatpush1.bf16.msra.mxu1 %v3323_v2  ;;  %v1772_v2 = vld [vmem:[%s3782_s4 + $0x10] sm:$0xff] }
 0x660   :  { %2588 = vmatprep.subr.bf16.mxu0 %v3134_v6  ;;  %2620 = vmatprep.subr.bf16.mxu1 %v3326_v4  ;;  %v1773_v4 = vld [vmem:[%s3782_s4 + $0x18] sm:$0xff] }
 0x661   :  { %v2631_v38 = vpack.c.bf16 %v1773_v4, %v1772_v2 }
 0x663   :  { %2590 = vmatpush1.bf16.msra.mxu0 %v3160_v12  ;;  %2622 = vmatpush1.bf16.msra.mxu1 %v3341_v11 }
 0x664   :  { %2592 = vmatprep.subr.bf16.mxu0 %v3163_v13  ;;  %2624 = vmatprep.subr.bf16.mxu1 %v3344_v14 }
 0x667   :  { %2594 = vmatpush1.bf16.msra.mxu0 %v3188_v20  ;;  %2626 = vmatpush1.bf16.msra.mxu1 %v3353_v18 }
 0x668   :  { %2628 = vmatprep.subr.bf16.mxu0 %v2627_v22 }
 0x71d   :  { %v1484_v28 = vpop.f32.mrb[12].mxu0  ;;  %v1555_v32 = vpop.f32.mrb[12].mxu1 }
 0x71e   :  { %v2673_v42 = vadd.f32 %v1484_v28, %v3379_v34  ;;  %v1486_v46 = vpop.f32.mrb[13].mxu0  ;;  %v1557_v54 = vpop.f32.mrb[13].mxu1  ;;  %v2689_v12 = vadd.f32 %v1555_v32, %v3385_v63 }
 0x71f   :  { %v2674_v55 = vadd.f32 %v1486_v46, %v3381_v35  ;;  %v2690_v5 = vadd.f32 %v1557_v54, %v3387_v1 }
 0x720   :  { %v2024_v61 = vmul.f32 -1.442695, %v2673_v42 }
 0x721   :  { %v2025_v62 = vmul.f32 -1.442695, %v2674_v55  ;;  %v2026_v6 = vmul.f32 -1.442695, %v2690_v5 }
 0x722   :  { %2820 = vpow2.f32 %v2024_v61 }
 0x723   :  { %2822 = vpow2.f32 %v2025_v62 }
 0x724   :  { %2824 = vpow2.f32 %v2026_v6 }
 0x725   :  { %2826 = vtanh.f32 %v2689_v12 }
 0x72c   :  { %v2821_v13 = vpop.eup %2820 }
 0x72d   :  { %v2823_v20 = vpop.eup %2822  ;;  %v1567_v29 = vadd.f32 1.0, %v2821_v13 }
 0x72e   :  { %v1573_v30 = vadd.f32 1.0, %v2823_v20  ;;  %v2825_v36 = vpop.eup %2824 }
 0x72f   :  { %2828 = vrcp.f32 %v1567_v29  ;;  %v2827_v37 = vpop.eup %2826  ;;  %v1580_v51 = vadd.f32 1.0, %v2825_v36 }
 0x730   :  { %2830 = vrcp.f32 %v1573_v30 }
 0x731   :  { %2832 = vrcp.f32 %v1580_v51 }
 0x739   :  { %v2829_v43 = vpop.eup %2828 }
 0x73a   :  { %v2831_v44 = vpop.eup %2830  ;;  %v1584_v50 = vmul.f32 %v2829_v43, %v2827_v37 }
 0x73b   :  { %v1583_v58 = vmul.f32 %v2831_v44, %v3621_v52  ;;  %v2833_v11 = vpop.eup %2832 }
 0x73d   :  { %v3671_v59 = vadd.f32 %v1584_v50, %v1583_v58 }
 0x73f   :  { %2834 = vtanh.f32 %v3671_v59 }
 0x749   :  { %v2835_v14 = vpop.eup %2834 }
 0x74a   :  { %v1587_v18 = vmul.f32 %v2835_v14, %v2833_v11 }
 0x74c   :  { %1654 = vmatmul.mubr.f32.vlgmr.msra.gmra.mrb[14].mxu0 %v1587_v18  ;;  %1725 = vmatmul.mubr.f32.vlgmr.msra.gmra.mrb[14].mxu1 %v1587_v18 }
 0x74d   :  { %2630 = vmatpush3.bf16.msra.mxu0 %v2627_v22  ;;  %2087 = vmatprep.mubr.f32.mxu0 %v3394_v40  ;;  %v1779_v40 = vld [vmem:[%s3782_s4 + $0x48] sm:$0xff] }
 0x74e   :  { %2632 = vmatprep.subr.bf16.mxu0 %v2631_v38  ;;  %v2643_v17 = vpack.c.bf16 %v1779_v40, %v1778_v16 }
 0x751   :  { %2634 = vmatpush3.bf16.msra.mxu0 %v2631_v38 }
 0x752   :  { %2636 = vmatprep.subr.bf16.mxu0 %v2635_v7 }
 0x755   :  { %2638 = vmatpush3.bf16.msra.mxu0 %v2635_v7 }
 0x756   :  { %2640 = vmatprep.subr.bf16.mxu0 %v2639_v10 }
 0x759   :  { %2642 = vmatpush3.bf16.msra.mxu0 %v2639_v10 }
 0x75a   :  { %2644 = vmatprep.subr.bf16.mxu0 %v2643_v17 }
 0x75d   :  { %2646 = vmatpush3.bf16.msra.mxu0 %v2643_v17 }
 0x75e   :  { %2648 = vmatprep.subr.bf16.mxu0 %v2647_v23 }
 0x761   :  { %2650 = vmatpush3.bf16.msra.mxu0 %v2647_v23 }
 0x762   :  { %2652 = vmatprep.subr.bf16.mxu0 %v2651_v26 }
 0x765   :  { %2654 = vmatpush3.bf16.msra.mxu0 %v2651_v26 }
 0x766   :  { %2656 = vmatprep.subr.bf16.mxu0 %v2655_v31 }
 0x769   :  { %2658 = vmatpush3.bf16.msra.mxu0 %v2655_v31 }
 0x76c   :  { %2088 = vmatmul.mubr.f32.vlgmr.msra.gmra.mrb[16].mxu0 %v3440_v41 }
 0x76d   :  { %2090 = vmatprep.mubr.f32.mxu0 %v3486_v45 }
 0x770   :  { %2091 = vmatmul.mubr.f32.gmra.mrb[18].mxu0 %v3532_v48 }
 0x771   :  { %2093 = vmatprep.mubr.f32.mxu0 %v3578_v53 }
 0x774   :  { %2094 = vmatmul.mubr.f32.gmra.mrb[20].mxu0 %v3624_v57 }
 0x775   :  { %2096 = vmatprep.mubr.f32.mxu0 %v1587_v18 }
 0x81f   :  { %v1655_v47 = vpop.f32.mrb[14].mxu0  ;;  %v1726_v49 = vpop.f32.mrb[14].mxu1 }
 0x820   :  { %v2675_v52 = vadd.f32 %v1655_v47, %v3379_v34  ;;  %v1657_v33 = vpop.f32.mrb[15].mxu0  ;;  %v1728_v56 = vpop.f32.mrb[15].mxu1  ;;  %v2691_v48 = vadd.f32 %v1726_v49, %v3385_v63  ;;  %v2030_v63 = vld [vmem:[%s3783_s5] ss:$0 sm:$0xff] }
 0x821   :  { %v2676_v3 = vadd.f32 %v1657_v33, %v3381_v35  ;;  %v2692_v41 = vadd.f32 %v1728_v56, %v3387_v1 }
 0x822   :  { %v2027_v21 = vmul.f32 -1.442695, %v2675_v52 }
 0x823   :  { %v2028_v22 = vmul.f32 -1.442695, %v2676_v3  ;;  %v2029_v45 = vmul.f32 -1.442695, %v2692_v41 }
 0x824   :  { %2836 = vpow2.f32 %v2027_v21 }
 0x825   :  { %2838 = vpow2.f32 %v2028_v22 }
 0x826   :  { %2840 = vpow2.f32 %v2029_v45 }
 0x827   :  { %2842 = vtanh.f32 %v2691_v48 }
 0x82e   :  { %v2837_v53 = vpop.eup %2836 }
 0x82f   :  { %v2839_v57 = vpop.eup %2838  ;;  %v1738_v28 = vadd.f32 1.0, %v2837_v53 }
 0x830   :  { %v1744_v32 = vadd.f32 1.0, %v2839_v57  ;;  %v2841_v34 = vpop.eup %2840 }
 0x831   :  { %2844 = vrcp.f32 %v1738_v28  ;;  %v2843_v42 = vpop.eup %2842  ;;  %v1751_v55 = vadd.f32 1.0, %v2841_v34 }
 0x832   :  { %2846 = vrcp.f32 %v1744_v32 }
 0x833   :  { %2848 = vrcp.f32 %v1751_v55 }
 0x83b   :  { %v2845_v35 = vpop.eup %2844 }
 0x83c   :  { %v2847_v46 = vpop.eup %2846  ;;  %v1755_v54 = vmul.f32 %v2845_v35, %v2843_v42 }
 0x83d   :  { %v1754_v61 = vmul.f32 %v2847_v46, %v3671_v59  ;;  %v2849_v44 = vpop.eup %2848 }
 0x83f   :  { %v2089_v1 = vpop.f32.mrb[16].mxu0  ;;  %v1756_v62 = vadd.f32 %v1755_v54, %v1754_v61 }
 0x840   :  { %v1865_v5 = vadd.f32 %v2089_v1, %v2030_v63  ;;  %v1859_v6 = vpop.f32.mrb[17].mxu0 }
 0x841   :  { %2850 = vtanh.f32 %v1756_v62  ;;  %v1860_v13 = vadd.f32 %v2030_v63, %v1859_v6 }
 0x842   :  { %1900 = vmax.xlane.f32.xlu0 %v1865_v5 }
 0x843   :  { %v2092_v12 = vpop.f32.mrb[18].mxu0 }
 0x844   :  { %v1875_v20 = vadd.f32 %v2092_v12, %v2030_v63  ;;  %v1869_v29 = vpop.f32.mrb[19].mxu0 }
 0x845   :  { %v1870_v36 = vadd.f32 %v2030_v63, %v1869_v29 }
 0x846   :  { %1904 = vmax.xlane.f32.xlu1 %v1875_v20  ;;  %1898 = vmax.xlane.f32.xlu0 %v1860_v13 }
 0x847   :  { %v2095_v30 = vpop.f32.mrb[20].mxu0 }
 0x848   :  { %v1879_v37 = vpop.f32.mrb[21].mxu0  ;;  %v1885_v51 = vadd.f32 %v2095_v30, %v2030_v63 }
 0x849   :  { %v1880_v43 = vadd.f32 %v2030_v63, %v1879_v37 }
 0x84a   :  { %1902 = vmax.xlane.f32.xlu1 %v1870_v36 }
 0x84b   :  { %v2851_v50 = vpop.eup %2850  ;;  %1906 = vmax.xlane.f32.xlu0 %v1880_v43 }
 0x84c   :  { %v1758_v58 = vmul.f32 %v2851_v50, %v2849_v44 }
 0x84e   :  { %1908 = vmax.xlane.f32.xlu1 %v1885_v51  ;;  %2097 = vmatmul.mubr.f32.gmra.mrb[22].mxu0 %v1758_v58 }
 0x8cf   :  { %v1901_v59 = vpop.xlane.xlu0 %1900 }
 0x8d0   :  { %v3730_v14 = vsub.f32 %v1865_v5, %v1901_v59 }
 0x8d2   :  { %v1924_v38 = vmul.f32 1.442695, %v3730_v14 }
 0x8d3   :  { %v1905_v2 = vpop.xlane.xlu1 %1904  ;;  %v1899_v4 = vpop.xlane.xlu0 %1898 }
 0x8d4   :  { %v3732_v18 = vsub.f32 %v1860_v13, %v1899_v4  ;;  %v3735_v60 = vsub.f32 %v1875_v20, %v1905_v2  ;;  %2852 = vpow2.f32 %v1924_v38 }
 0x8d6   :  { %v1922_v0 = vmul.f32 1.442695, %v3732_v18  ;;  %v1928_v10 = vmul.f32 1.442695, %v3735_v60 }
 0x8d7   :  { %v1903_v11 = vpop.xlane.xlu1 %1902 }
 0x8d8   :  { %v3738_v7 = vsub.f32 %v1870_v36, %v1903_v11  ;;  %v1907_v9 = vpop.xlane.xlu0 %1906  ;;  %2854 = vpow2.f32 %v1922_v0 }
 0x8d9   :  { %v3744_v17 = vsub.f32 %v1880_v43, %v1907_v9  ;;  %2856 = vpow2.f32 %v1928_v10 }
 0x8da   :  { %v1926_v40 = vmul.f32 1.442695, %v3738_v7 }
 0x8db   :  { %v1909_v8 = vpop.xlane.xlu1 %1908  ;;  %v1930_v23 = vmul.f32 1.442695, %v3744_v17 }
 0x8dc   :  { %v3741_v16 = vsub.f32 %v1885_v51, %v1909_v8  ;;  %2858 = vpow2.f32 %v1926_v40 }
 0x8de   :  { %v1932_v15 = vmul.f32 1.442695, %v3741_v16  ;;  %v2853_v27 = vpop.eup %2852 }
 0x8e0   :  { %2860 = vpow2.f32 %v1932_v15 }
 0x8e1   :  { %2862 = vpow2.f32 %v1930_v23 }
 0x8e2   :  { %v2855_v39 = vpop.eup %2854 }
 0x8e3   :  { %v2857_v31 = vpop.eup %2856 }
 0x8e6   :  { %v2859_v47 = vpop.eup %2858 }
 0x8ea   :  { %v2861_v49 = vpop.eup %2860 }
 0x8eb   :  { %v2863_v52 = vpop.eup %2862 }
 0x921   :  { %v2098_v19 = vpop.f32.mrb[22].mxu0 }
 0x922   :  { %v1895_v24 = vadd.f32 %v2098_v19, %v2030_v63  ;;  %v1889_v25 = vpop.f32.mrb[23].mxu0 }
 0x923   :  { %v1890_v26 = vadd.f32 %v2030_v63, %v1889_v25 }
 0x924   :  { %1912 = vmax.xlane.f32.xlu1 %v1895_v24 }
 0x925   :  { %1910 = vmax.xlane.f32.xlu0 %v1890_v26 }
 0x928   :  { %1940 = vadd.xlane.f32.xlu1 %v2853_v27 }
 0x929   :  { %1938 = vadd.xlane.f32.xlu0 %v2855_v39 }
 0x92c   :  { %1944 = vadd.xlane.f32.xlu1 %v2857_v31 }
 0x92d   :  { %1942 = vadd.xlane.f32.xlu0 %v2859_v47 }
 0x930   :  { %1948 = vadd.xlane.f32.xlu1 %v2861_v49 }
 0x931   :  { %1946 = vadd.xlane.f32.xlu0 %v2863_v52 }
 0x9b1   :  { %v1913_v33 = vpop.xlane.xlu1 %1912 }
 0x9b2   :  { %v1921_v56 = vsub.f32 %v1895_v24, %v1913_v33  ;;  %v1911_v3 = vpop.xlane.xlu0 %1910 }
 0x9b3   :  { %v1920_v21 = vsub.f32 %v1890_v26, %v1911_v3 }
 0x9b4   :  { %v1936_v22 = vmul.f32 1.442695, %v1921_v56 }
 0x9b5   :  { %v1934_v41 = vmul.f32 1.442695, %v1920_v21  ;;  %v1941_v45 = vpop.xlane.xlu1 %1940 }
 0x9b6   :  { %2864 = vpow2.f32 %v1936_v22  ;;  %v1939_v48 = vpop.xlane.xlu0 %1938 }
 0x9b7   :  { %2866 = vpow2.f32 %v1934_v41 }
 0x9b8   :  { %2868 = vlog2.f32 %v1941_v45 }
 0x9b9   :  { %2870 = vlog2.f32 %v1939_v48  ;;  %v1945_v53 = vpop.xlane.xlu1 %1944 }
 0x9ba   :  { %2872 = vlog2.f32 %v1945_v53  ;;  %v1943_v57 = vpop.xlane.xlu0 %1942 }
 0x9bb   :  { %2874 = vlog2.f32 %v1943_v57 }
 0x9bd   :  { %v1949_v28 = vpop.xlane.xlu1 %1948 }
 0x9be   :  { %2876 = vlog2.f32 %v1949_v28  ;;  %v1947_v32 = vpop.xlane.xlu0 %1946 }
 0x9bf   :  { %2878 = vlog2.f32 %v1947_v32 }
 0x9c0   :  { %v2865_v34 = vpop.eup %2864 }
 0x9c1   :  { %v2867_v42 = vpop.eup %2866  ;;  %1952 = vadd.xlane.f32.xlu1 %v2865_v34 }
 0x9c2   :  { %v2869_v35 = vpop.eup %2868  ;;  %1950 = vadd.xlane.f32.xlu0 %v2867_v42 }
 0x9c3   :  { %v2871_v46 = vpop.eup %2870  ;;  %v1957_v54 = vmul.f32 0.6931472, %v2869_v35 }
 0x9c4   :  { %v2873_v55 = vpop.eup %2872  ;;  %v1955_v61 = vmul.f32 0.6931472, %v2871_v46 }
 0x9c5   :  { %v2875_v63 = vpop.eup %2874  ;;  %v1971_v1 = vsub.f32 %v3730_v14, %v1957_v54  ;;  %v1961_v62 = vmul.f32 0.6931472, %v2873_v55 }
 0x9c6   :  { %v1970_v5 = vsub.f32 %v3732_v18, %v1955_v61  ;;  %v1959_v6 = vmul.f32 0.6931472, %v2875_v63 }
 0x9c7   :  { %1979 = vst [vmem:[%s3784_s6 + $0x8] sm:$0xff] %v1971_v1  ;;  %v1973_v12 = vsub.f32 %v3735_v60, %v1961_v62 }
 0x9c8   :  { %v2877_v13 = vpop.eup %2876  ;;  %1978 = vst [vmem:[%s3784_s6] sm:$0xff] %v1970_v5  ;;  %v1972_v20 = vsub.f32 %v3738_v7, %v1959_v6 }
 0x9c9   :  { %v2879_v29 = vpop.eup %2878  ;;  %1981 = vst [vmem:[%s3784_s6 + $0x18] sm:$0xff] %v1973_v12  ;;  %v1965_v30 = vmul.f32 0.6931472, %v2877_v13 }
 0x9ca   :  { %1980 = vst [vmem:[%s3784_s6 + $0x10] sm:$0xff] %v1972_v20  ;;  %v1963_v36 = vmul.f32 0.6931472, %v2879_v29 }
 0x9cb   :  { %v1975_v37 = vsub.f32 %v3741_v16, %v1965_v30 }
 0x9cc   :  { %v1974_v43 = vsub.f32 %v3744_v17, %v1963_v36 }
 0x9cd   :  { %1983 = vst [vmem:[%s3784_s6 + $0x28] sm:$0xff] %v1975_v37 }
 0x9ce   :  { %1982 = vst [vmem:[%s3784_s6 + $0x20] sm:$0xff] %v1974_v43 }
 0xa4e   :  { %v1953_v44 = vpop.xlane.xlu1 %1952 }
 0xa4f   :  { %2880 = vlog2.f32 %v1953_v44  ;;  %v1951_v50 = vpop.xlane.xlu0 %1950 }
 0xa50   :  { %2882 = vlog2.f32 %v1951_v50 }
 0xa59   :  { %v2881_v51 = vpop.eup %2880 }
 0xa5a   :  { %v2883_v58 = vpop.eup %2882  ;;  %v1969_v59 = vmul.f32 0.6931472, %v2881_v51 }
 0xa5b   :  { %v1967_v2 = vmul.f32 0.6931472, %v2883_v58 }
 0xa5c   :  { %v1977_v4 = vsub.f32 %v1921_v56, %v1969_v59 }
 0xa5d   :  { %v1976_v11 = vsub.f32 %v1920_v21, %v1967_v2 }
 0xa5e   :  { %1985 = vst [vmem:[%s3784_s6 + $0x38] sm:$0xff] %v1977_v4 }
 0xa5f   :  { %1984 = vst [vmem:[%s3784_s6 + $0x30] sm:$0xff] %v1976_v11 }

</bundles_post_ra>
